<compile_context>
chip_gen: v6e
topology: v6e:2x2x1
jax: 0.10.0
libtpu: 0.0.40
codegen_flags: <defaults>
</compile_context>

<pallas_src>
import functools

import jax
import jax.numpy as jnp
from jax.experimental import pallas as pl
from jax.experimental.pallas import tpu as pltpu

_BN_EPS = 1e-5


def _round_up(x, m):
    return (x + m - 1) // m * m


# ----------------------------------------------------------------------------
# Fused matmul kernel: out = maybe_relu((x @ w) * scale + bias [+ residual])
# ----------------------------------------------------------------------------
def _fused_matmul_kernel(*refs, relu, has_residual):
    if has_residual:
        x_ref, w_ref, s_ref, b_ref, r_ref, o_ref, acc_ref = refs
    else:
        x_ref, w_ref, s_ref, b_ref, o_ref, acc_ref = refs
        r_ref = None

    k = pl.program_id(2)

    @pl.when(k == 0)
    def _():
        acc_ref[...] = jnp.zeros_like(acc_ref)

    acc_ref[...] += jnp.dot(x_ref[...], w_ref[...],
                            preferred_element_type=jnp.float32)

    @pl.when(k == pl.num_programs(2) - 1)
    def _():
        out = acc_ref[...] * s_ref[...] + b_ref[...]
        if r_ref is not None:
            out = out + r_ref[...].astype(jnp.float32)
        if relu:
            out = jnp.maximum(out, 0.0)
        o_ref[...] = out.astype(o_ref.dtype)


def fused_matmul(x, w, scale, bias, residual=None, relu=True):
    """maybe_relu((x @ w) * scale + bias [+ residual]) as one Pallas call."""
    M, K = x.shape
    K2, N = w.shape
    assert K == K2, (x.shape, w.shape)

    # Tile selection: big tiles, padded-to-block (never fall back to tiny
    # tiles just because a dim is not divisible).  Small dims use the
    # full-extent escape hatch of the (8, 128) rule.
    tm = min(512, _round_up(M, 8))
    tn = N if N <= 512 else 256
    tk = K if K <= 1024 else 512

    Mp = _round_up(M, tm)
    Np = _round_up(N, tn)
    Kp = _round_up(K, tk)

    if (Mp, Kp) != (M, K):
        x = jnp.pad(x, ((0, Mp - M), (0, Kp - K)))
    if (Kp, Np) != (K, N):
        w = jnp.pad(w, ((0, Kp - K), (0, Np - N)))

    def _pad_vec(v):
        v = v.reshape(1, N).astype(jnp.float32)
        if Np != N:
            v = jnp.pad(v, ((0, 0), (0, Np - N)))
        return v

    scale2d = _pad_vec(scale)
    bias2d = _pad_vec(bias)

    has_residual = residual is not None
    inputs = [x, w, scale2d, bias2d]
    in_specs = [
        pl.BlockSpec((tm, tk), lambda i, j, k: (i, k)),
        pl.BlockSpec((tk, tn), lambda i, j, k: (k, j)),
        pl.BlockSpec((1, tn), lambda i, j, k: (0, j)),
        pl.BlockSpec((1, tn), lambda i, j, k: (0, j)),
    ]
    if has_residual:
        r = residual
        if r.shape != (Mp, Np):
            r = jnp.pad(r, ((0, Mp - M), (0, Np - N)))
        inputs.append(r)
        in_specs.append(pl.BlockSpec((tm, tn), lambda i, j, k: (i, j)))

    kernel = functools.partial(_fused_matmul_kernel, relu=relu,
                               has_residual=has_residual)

    out = pl.pallas_call(
        kernel,
        out_shape=jax.ShapeDtypeStruct((Mp, Np), x.dtype),
        grid_spec=pltpu.PrefetchScalarGridSpec(
            num_scalar_prefetch=0,
            grid=(Mp // tm, Np // tn, Kp // tk),
            in_specs=in_specs,
            out_specs=pl.BlockSpec((tm, tn), lambda i, j, k: (i, j)),
            scratch_shapes=[pltpu.VMEM((tm, tn), jnp.float32)],
        ),
        compiler_params=pltpu.CompilerParams(
            dimension_semantics=("parallel", "parallel", "arbitrary"),
        ),
    )(*inputs)

    if (Mp, Np) != (M, N):
        out = out[:M, :N]
    return out


# ----------------------------------------------------------------------------
# ConvBnReLu building blocks (NHWC) on top of the fused matmul kernel
# ----------------------------------------------------------------------------
def _bn_scale_bias(conv_bias, gamma, beta, mean, var, eps=_BN_EPS):
    scale = gamma / jnp.sqrt(var + eps)
    bias = (conv_bias - mean) * scale + beta
    return scale, bias


def conv1x1_bn(x, p, stride=1, relu=True, residual=None):
    """1x1 conv (stride s) + folded BN (+ residual) (+ ReLU).  x: NHWC."""
    xs = x[:, ::stride, ::stride, :]
    n, h, w, cin = xs.shape
    cout = p["w"].shape[-1]
    scale, bias = _bn_scale_bias(p["b"], p["gamma"], p["beta"], p["mean"], p["var"])
    res2d = residual.reshape(n * h * w, cout) if residual is not None else None
    y = fused_matmul(xs.reshape(n * h * w, cin), p["w"], scale, bias,
                     residual=res2d, relu=relu)
    return y.reshape(n, h, w, cout)


def conv3x3_bn_relu(x, p, dilation=1):
    """3x3 conv (stride 1, padding=dilation, dilation=dilation) + BN + ReLU."""
    n, h, w, cin = x.shape
    d = dilation
    cout = p["w"].shape[-1]
    xp = jnp.pad(x, ((0, 0), (d, d), (d, d), (0, 0)))
    cols = [xp[:, ky * d:ky * d + h, kx * d:kx * d + w, :]
            for ky in range(3) for kx in range(3)]
    patches = jnp.concatenate(cols, axis=-1).reshape(n * h * w, 9 * cin)
    w2d = p["w"].reshape(9 * cin, cout)  # rows ordered (ky, kx, cin) = cols order
    scale, bias = _bn_scale_bias(p["b"], p["gamma"], p["beta"], p["mean"], p["var"])
    y = fused_matmul(patches, w2d, scale, bias, relu=True)
    return y.reshape(n, h, w, cout)


def res_layer_forward(x_nchw, params, *, stride, dilation, short_cut_projection):
    """Pallas forward of ResLayer (NCHW in / NCHW out)."""
    x = jnp.transpose(x_nchw, (0, 2, 3, 1))  # NHWC: channels on the lane axis
    x1 = conv1x1_bn(x, params["reduce"], stride=stride, relu=True)
    x1 = conv3x3_bn_relu(x1, params["conv3x3"], dilation=dilation)
    if short_cut_projection:
        sc = conv1x1_bn(x, params["shortcut"], stride=stride, relu=False)
    else:
        sc = x
    # "increase" 1x1 conv + BN fused with the residual add and the final ReLU.
    out = conv1x1_bn(x1, params["increase"], stride=1, relu=True, residual=sc)
    return jnp.transpose(out, (0, 3, 1, 2))


# ----------------------------------------------------------------------------
# Pure-JAX reference (lax conv) and parameter construction
# ----------------------------------------------------------------------------
def _ref_conv_bn(x, w_hwio, b, gamma, beta, mean, var, stride, dilation,
                 padding, relu):
    y = jax.lax.conv_general_dilated(
        x, w_hwio, window_strides=(stride, stride),
        padding=[(padding, padding), (padding, padding)],
        rhs_dilation=(dilation, dilation),
        dimension_numbers=("NHWC", "HWIO", "NHWC"),
        precision=jax.lax.Precision.HIGHEST)
    y = (y + b - mean) * (gamma / jnp.sqrt(var + _BN_EPS)) + beta
    if relu:
        y = jnp.maximum(y, 0.0)
    return y


def ref_res_layer(x_nchw, params, *, stride, dilation, short_cut_projection):
    x = jnp.transpose(x_nchw, (0, 2, 3, 1))
    p = params["reduce"]
    x1 = _ref_conv_bn(x, p["w"].reshape(1, 1, *p["w"].shape), p["b"], p["gamma"],
                      p["beta"], p["mean"], p["var"], stride, 1, 0, True)
    p = params["conv3x3"]
    x1 = _ref_conv_bn(x1, p["w"], p["b"], p["gamma"], p["beta"], p["mean"],
                      p["var"], 1, dilation, dilation, True)
    p = params["increase"]
    x1 = _ref_conv_bn(x1, p["w"].reshape(1, 1, *p["w"].shape), p["b"], p["gamma"],
                      p["beta"], p["mean"], p["var"], 1, 1, 0, False)
    if short_cut_projection:
        p = params["shortcut"]
        sc = _ref_conv_bn(x, p["w"].reshape(1, 1, *p["w"].shape), p["b"],
                          p["gamma"], p["beta"], p["mean"], p["var"],
                          stride, 1, 0, False)
    else:
        sc = x
    out = jnp.maximum(x1 + sc, 0.0)
    return jnp.transpose(out, (0, 3, 1, 2))


def make_conv_bn_params(key, cin, cout, ksize):
    kw, kb, kg, kbt, km, kv = jax.random.split(key, 6)
    if ksize == 1:
        w = 0.2 * jax.random.normal(kw, (cin, cout), jnp.float32)
    else:
        w = 0.2 * jax.random.normal(kw, (ksize, ksize, cin, cout), jnp.float32)
    return dict(
        w=w,
        b=0.1 * jax.random.normal(kb, (cout,), jnp.float32),
        gamma=1.0 + 0.1 * jax.random.normal(kg, (cout,), jnp.float32),
        beta=0.1 * jax.random.normal(kbt, (cout,), jnp.float32),
        mean=0.1 * jax.random.normal(km, (cout,), jnp.float32),
        var=1.0 + 0.5 * jax.random.uniform(kv, (cout,), jnp.float32),
    )


def make_res_layer_params(key, cin, cout, short_cut_projection):
    cmid = cout // 4
    k0, k1, k2, k3 = jax.random.split(key, 4)
    params = dict(
        reduce=make_conv_bn_params(k0, cin, cmid, 1),
        conv3x3=make_conv_bn_params(k1, cmid, cmid, 3),
        increase=make_conv_bn_params(k2, cmid, cout, 1),
    )
    if short_cut_projection:
        params["shortcut"] = make_conv_bn_params(k3, cin, cout, 1)
    return params


if __name__ == "__main__":
    key = jax.random.PRNGKey(0)

    configs = [
        # projection shortcut + stride 2
        dict(cin=16, cout=32, stride=2, dilation=1, proj=True, shape=(2, 16, 16, 16)),
        # identity shortcut + dilation 2
        dict(cin=32, cout=32, stride=1, dilation=2, proj=False, shape=(2, 32, 16, 16)),
    ]

    for idx, cfg in enumerate(configs):
        kx, kp, key = jax.random.split(key, 3)
        x = jax.random.normal(kx, cfg["shape"], jnp.float32)  # NCHW
        params = make_res_layer_params(kp, cfg["cin"], cfg["cout"], cfg["proj"])

        fwd = jax.jit(functools.partial(
            res_layer_forward, stride=cfg["stride"], dilation=cfg["dilation"],
            short_cut_projection=cfg["proj"]))
        out = jax.block_until_ready(fwd(x, params))

        ref = ref_res_layer(x, params, stride=cfg["stride"],
                            dilation=cfg["dilation"],
                            short_cut_projection=cfg["proj"])
        assert out.shape == ref.shape, (idx, out.shape, ref.shape)
        max_err = float(jnp.max(jnp.abs(out - ref)))
        assert jnp.allclose(out, ref, rtol=2e-2, atol=2e-2), (idx, max_err)

    print("KERNEL_OK")
</pallas_src>

<mosaic_0001>
module attributes {stable_mosaic.version = 11 : i64} {
  func.func @_fused_matmul_kernel(%arg0: i32, %arg1: i32, %arg2: i32, %arg3: memref<128x16xf32, #tpu.memory_space<vmem>>, %arg4: memref<16x8xf32, #tpu.memory_space<vmem>>, %arg5: memref<1x8xf32, #tpu.memory_space<vmem>>, %arg6: memref<1x8xf32, #tpu.memory_space<vmem>>, %arg7: memref<128x8xf32, #tpu.memory_space<vmem>>, %arg8: memref<128x8xf32, #tpu.memory_space<vmem>>) attributes {dimension_semantics = [#tpu.dimension_semantics<parallel>, #tpu.dimension_semantics<parallel>, #tpu.dimension_semantics<arbitrary>], iteration_bounds = array<i64: 1, 1, 1>, scalar_prefetch = 0 : i64, scratch_operands = 1 : i64, tpu.core_type = #tpu.core_type<tc>, window_params = [{transform_indices = @transform_0, window_bounds = array<i64: 128, 16>}, {transform_indices = @transform_1, window_bounds = array<i64: 16, 8>}, {transform_indices = @transform_2, window_bounds = array<i64: 1, 8>}, {transform_indices = @transform_3, window_bounds = array<i64: 1, 8>}, {transform_indices = @transform_4, window_bounds = array<i64: 128, 8>}]} {
    %c0_i32 = arith.constant 0 : i32
    %0 = arith.cmpi eq, %arg2, %c0_i32 : i32
    %1 = arith.extui %0 : i1 to i32
    %c0_i32_0 = arith.constant 0 : i32
    %2 = arith.cmpi ne, %1, %c0_i32_0 : i32
    scf.if %2 {
      %cst_10 = arith.constant 0.000000e+00 : f32
      %12 = vector.broadcast %cst_10 : f32 to vector<128x8xf32>
      %c0_11 = arith.constant 0 : index
      %c0_12 = arith.constant 0 : index
      %13 = vector.load %arg8[%c0_11, %c0_12] : memref<128x8xf32, #tpu.memory_space<vmem>>, vector<128x8xf32>
      tpu.vector_store %arg8[%c0_11, %c0_12], %12 {strides = array<i32>} : memref<128x8xf32, #tpu.memory_space<vmem>>, vector<128x8xf32>,
    } else {
    }
    %c0 = arith.constant 0 : index
    %c0_1 = arith.constant 0 : index
    %3 = vector.load %arg8[%c0, %c0_1] : memref<128x8xf32, #tpu.memory_space<vmem>>, vector<128x8xf32>
    %c0_2 = arith.constant 0 : index
    %c0_3 = arith.constant 0 : index
    %4 = vector.load %arg3[%c0_2, %c0_3] : memref<128x16xf32, #tpu.memory_space<vmem>>, vector<128x16xf32>
    %c0_4 = arith.constant 0 : index
    %c0_5 = arith.constant 0 : index
    %5 = vector.load %arg4[%c0_4, %c0_5] : memref<16x8xf32, #tpu.memory_space<vmem>>, vector<16x8xf32>
    %cst = arith.constant dense<0.000000e+00> : vector<128x8xf32>
    %6 = tpu.matmul %4, %5, %cst {dimension_numbers = #tpu.dot_dimension_numbers<[1], [0], [0], [1], [0, 0, 1, 1], [], []>} : vector<128x16xf32>, vector<16x8xf32>, vector<128x8xf32> -> vector<128x8xf32>
    %7 = arith.addf %3, %6 : vector<128x8xf32>
    %c0_6 = arith.constant 0 : index
    %c0_7 = arith.constant 0 : index
    %8 = vector.load %arg8[%c0_6, %c0_7] : memref<128x8xf32, #tpu.memory_space<vmem>>, vector<128x8xf32>
    tpu.vector_store %arg8[%c0_6, %c0_7], %7 {strides = array<i32>} : memref<128x8xf32, #tpu.memory_space<vmem>>, vector<128x8xf32>,
    %c0_i32_8 = arith.constant 0 : i32
    %9 = arith.cmpi eq, %arg2, %c0_i32_8 : i32
    %10 = arith.extui %9 : i1 to i32
    %c0_i32_9 = arith.constant 0 : i32
    %11 = arith.cmpi ne, %10, %c0_i32_9 : i32
    scf.if %11 {
      %c0_10 = arith.constant 0 : index
      %c0_11 = arith.constant 0 : index
      %12 = vector.load %arg8[%c0_10, %c0_11] : memref<128x8xf32, #tpu.memory_space<vmem>>, vector<128x8xf32>
      %c0_12 = arith.constant 0 : index
      %c0_13 = arith.constant 0 : index
      %13 = vector.load %arg5[%c0_12, %c0_13] : memref<1x8xf32, #tpu.memory_space<vmem>>, vector<1x8xf32>
      %14 = vector.broadcast %13 : vector<1x8xf32> to vector<128x8xf32>
      %15 = arith.mulf %12, %14 : vector<128x8xf32>
      %c0_14 = arith.constant 0 : index
      %c0_15 = arith.constant 0 : index
      %16 = vector.load %arg6[%c0_14, %c0_15] : memref<1x8xf32, #tpu.memory_space<vmem>>, vector<1x8xf32>
      %17 = vector.broadcast %16 : vector<1x8xf32> to vector<128x8xf32>
      %18 = arith.addf %15, %17 : vector<128x8xf32>
      %cst_16 = arith.constant 0.000000e+00 : f32
      %19 = vector.broadcast %cst_16 : f32 to vector<128x8xf32>
      %20 = arith.maximumf %18, %19 : vector<128x8xf32>
      %c0_17 = arith.constant 0 : index
      %c0_18 = arith.constant 0 : index
      %21 = vector.load %arg7[%c0_17, %c0_18] : memref<128x8xf32, #tpu.memory_space<vmem>>, vector<128x8xf32>
      tpu.vector_store %arg7[%c0_17, %c0_18], %20 {strides = array<i32>} : memref<128x8xf32, #tpu.memory_space<vmem>>, vector<128x8xf32>,
    } else {
    }
    return
  }
  func.func @transform_0(%arg0: i32, %arg1: i32, %arg2: i32) -> (i32, i32) {
    %c0_i32 = arith.constant 0 : i32
    return %arg0, %arg2 : i32, i32
  }
  func.func @transform_1(%arg0: i32, %arg1: i32, %arg2: i32) -> (i32, i32) {
    %c0_i32 = arith.constant 0 : i32
    return %arg2, %arg1 : i32, i32
  }
  func.func @transform_2(%arg0: i32, %arg1: i32, %arg2: i32) -> (i32, i32) {
    %c0_i32 = arith.constant 0 : i32
    %c0_i32_0 = arith.constant 0 : i32
    return %c0_i32, %arg1 : i32, i32
  }
  func.func @transform_3(%arg0: i32, %arg1: i32, %arg2: i32) -> (i32, i32) {
    %c0_i32 = arith.constant 0 : i32
    %c0_i32_0 = arith.constant 0 : i32
    return %c0_i32, %arg1 : i32, i32
  }
  func.func @transform_4(%arg0: i32, %arg1: i32, %arg2: i32) -> (i32, i32) {
    %c0_i32 = arith.constant 0 : i32
    return %arg0, %arg1 : i32, i32
  }
}

module attributes {stable_mosaic.version = 11 : i64} {
  func.func @_fused_matmul_kernel(%arg0: i32, %arg1: i32, %arg2: i32, %arg3: memref<128x72xf32, #tpu.memory_space<vmem>>, %arg4: memref<72x8xf32, #tpu.memory_space<vmem>>, %arg5: memref<1x8xf32, #tpu.memory_space<vmem>>, %arg6: memref<1x8xf32, #tpu.memory_space<vmem>>, %arg7: memref<128x8xf32, #tpu.memory_space<vmem>>, %arg8: memref<128x8xf32, #tpu.memory_space<vmem>>) attributes {dimension_semantics = [#tpu.dimension_semantics<parallel>, #tpu.dimension_semantics<parallel>, #tpu.dimension_semantics<arbitrary>], iteration_bounds = array<i64: 1, 1, 1>, scalar_prefetch = 0 : i64, scratch_operands = 1 : i64, tpu.core_type = #tpu.core_type<tc>, window_params = [{transform_indices = @transform_0, window_bounds = array<i64: 128, 72>}, {transform_indices = @transform_1, window_bounds = array<i64: 72, 8>}, {transform_indices = @transform_2, window_bounds = array<i64: 1, 8>}, {transform_indices = @transform_3, window_bounds = array<i64: 1, 8>}, {transform_indices = @transform_4, window_bounds = array<i64: 128, 8>}]} {
    %c0_i32 = arith.constant 0 : i32
    %0 = arith.cmpi eq, %arg2, %c0_i32 : i32
    %1 = arith.extui %0 : i1 to i32
    %c0_i32_0 = arith.constant 0 : i32
    %2 = arith.cmpi ne, %1, %c0_i32_0 : i32
    scf.if %2 {
      %cst_10 = arith.constant 0.000000e+00 : f32
      %12 = vector.broadcast %cst_10 : f32 to vector<128x8xf32>
      %c0_11 = arith.constant 0 : index
      %c0_12 = arith.constant 0 : index
      %13 = vector.load %arg8[%c0_11, %c0_12] : memref<128x8xf32, #tpu.memory_space<vmem>>, vector<128x8xf32>
      tpu.vector_store %arg8[%c0_11, %c0_12], %12 {strides = array<i32>} : memref<128x8xf32, #tpu.memory_space<vmem>>, vector<128x8xf32>,
    } else {
    }
    %c0 = arith.constant 0 : index
    %c0_1 = arith.constant 0 : index
    %3 = vector.load %arg8[%c0, %c0_1] : memref<128x8xf32, #tpu.memory_space<vmem>>, vector<128x8xf32>
    %c0_2 = arith.constant 0 : index
    %c0_3 = arith.constant 0 : index
    %4 = vector.load %arg3[%c0_2, %c0_3] : memref<128x72xf32, #tpu.memory_space<vmem>>, vector<128x72xf32>
    %c0_4 = arith.constant 0 : index
    %c0_5 = arith.constant 0 : index
    %5 = vector.load %arg4[%c0_4, %c0_5] : memref<72x8xf32, #tpu.memory_space<vmem>>, vector<72x8xf32>
    %cst = arith.constant dense<0.000000e+00> : vector<128x8xf32>
    %6 = tpu.matmul %4, %5, %cst {dimension_numbers = #tpu.dot_dimension_numbers<[1], [0], [0], [1], [0, 0, 1, 1], [], []>} : vector<128x72xf32>, vector<72x8xf32>, vector<128x8xf32> -> vector<128x8xf32>
    %7 = arith.addf %3, %6 : vector<128x8xf32>
    %c0_6 = arith.constant 0 : index
    %c0_7 = arith.constant 0 : index
    %8 = vector.load %arg8[%c0_6, %c0_7] : memref<128x8xf32, #tpu.memory_space<vmem>>, vector<128x8xf32>
    tpu.vector_store %arg8[%c0_6, %c0_7], %7 {strides = array<i32>} : memref<128x8xf32, #tpu.memory_space<vmem>>, vector<128x8xf32>,
    %c0_i32_8 = arith.constant 0 : i32
    %9 = arith.cmpi eq, %arg2, %c0_i32_8 : i32
    %10 = arith.extui %9 : i1 to i32
    %c0_i32_9 = arith.constant 0 : i32
    %11 = arith.cmpi ne, %10, %c0_i32_9 : i32
    scf.if %11 {
      %c0_10 = arith.constant 0 : index
      %c0_11 = arith.constant 0 : index
      %12 = vector.load %arg8[%c0_10, %c0_11] : memref<128x8xf32, #tpu.memory_space<vmem>>, vector<128x8xf32>
      %c0_12 = arith.constant 0 : index
      %c0_13 = arith.constant 0 : index
      %13 = vector.load %arg5[%c0_12, %c0_13] : memref<1x8xf32, #tpu.memory_space<vmem>>, vector<1x8xf32>
      %14 = vector.broadcast %13 : vector<1x8xf32> to vector<128x8xf32>
      %15 = arith.mulf %12, %14 : vector<128x8xf32>
      %c0_14 = arith.constant 0 : index
      %c0_15 = arith.constant 0 : index
      %16 = vector.load %arg6[%c0_14, %c0_15] : memref<1x8xf32, #tpu.memory_space<vmem>>, vector<1x8xf32>
      %17 = vector.broadcast %16 : vector<1x8xf32> to vector<128x8xf32>
      %18 = arith.addf %15, %17 : vector<128x8xf32>
      %cst_16 = arith.constant 0.000000e+00 : f32
      %19 = vector.broadcast %cst_16 : f32 to vector<128x8xf32>
      %20 = arith.maximumf %18, %19 : vector<128x8xf32>
      %c0_17 = arith.constant 0 : index
      %c0_18 = arith.constant 0 : index
      %21 = vector.load %arg7[%c0_17, %c0_18] : memref<128x8xf32, #tpu.memory_space<vmem>>, vector<128x8xf32>
      tpu.vector_store %arg7[%c0_17, %c0_18], %20 {strides = array<i32>} : memref<128x8xf32, #tpu.memory_space<vmem>>, vector<128x8xf32>,
    } else {
    }
    return
  }
  func.func @transform_0(%arg0: i32, %arg1: i32, %arg2: i32) -> (i32, i32) {
    %c0_i32 = arith.constant 0 : i32
    return %arg0, %arg2 : i32, i32
  }
  func.func @transform_1(%arg0: i32, %arg1: i32, %arg2: i32) -> (i32, i32) {
    %c0_i32 = arith.constant 0 : i32
    return %arg2, %arg1 : i32, i32
  }
  func.func @transform_2(%arg0: i32, %arg1: i32, %arg2: i32) -> (i32, i32) {
    %c0_i32 = arith.constant 0 : i32
    %c0_i32_0 = arith.constant 0 : i32
    return %c0_i32, %arg1 : i32, i32
  }
  func.func @transform_3(%arg0: i32, %arg1: i32, %arg2: i32) -> (i32, i32) {
    %c0_i32 = arith.constant 0 : i32
    %c0_i32_0 = arith.constant 0 : i32
    return %c0_i32, %arg1 : i32, i32
  }
  func.func @transform_4(%arg0: i32, %arg1: i32, %arg2: i32) -> (i32, i32) {
    %c0_i32 = arith.constant 0 : i32
    return %arg0, %arg1 : i32, i32
  }
}

module attributes {stable_mosaic.version = 11 : i64} {
  func.func @_fused_matmul_kernel(%arg0: i32, %arg1: i32, %arg2: i32, %arg3: memref<128x16xf32, #tpu.memory_space<vmem>>, %arg4: memref<16x32xf32, #tpu.memory_space<vmem>>, %arg5: memref<1x32xf32, #tpu.memory_space<vmem>>, %arg6: memref<1x32xf32, #tpu.memory_space<vmem>>, %arg7: memref<128x32xf32, #tpu.memory_space<vmem>>, %arg8: memref<128x32xf32, #tpu.memory_space<vmem>>) attributes {dimension_semantics = [#tpu.dimension_semantics<parallel>, #tpu.dimension_semantics<parallel>, #tpu.dimension_semantics<arbitrary>], iteration_bounds = array<i64: 1, 1, 1>, scalar_prefetch = 0 : i64, scratch_operands = 1 : i64, tpu.core_type = #tpu.core_type<tc>, window_params = [{transform_indices = @transform_0, window_bounds = array<i64: 128, 16>}, {transform_indices = @transform_1, window_bounds = array<i64: 16, 32>}, {transform_indices = @transform_2, window_bounds = array<i64: 1, 32>}, {transform_indices = @transform_3, window_bounds = array<i64: 1, 32>}, {transform_indices = @transform_4, window_bounds = array<i64: 128, 32>}]} {
    %c0_i32 = arith.constant 0 : i32
    %0 = arith.cmpi eq, %arg2, %c0_i32 : i32
    %1 = arith.extui %0 : i1 to i32
    %c0_i32_0 = arith.constant 0 : i32
    %2 = arith.cmpi ne, %1, %c0_i32_0 : i32
    scf.if %2 {
      %cst_10 = arith.constant 0.000000e+00 : f32
      %12 = vector.broadcast %cst_10 : f32 to vector<128x32xf32>
      %c0_11 = arith.constant 0 : index
      %c0_12 = arith.constant 0 : index
      %13 = vector.load %arg8[%c0_11, %c0_12] : memref<128x32xf32, #tpu.memory_space<vmem>>, vector<128x32xf32>
      tpu.vector_store %arg8[%c0_11, %c0_12], %12 {strides = array<i32>} : memref<128x32xf32, #tpu.memory_space<vmem>>, vector<128x32xf32>,
    } else {
    }
    %c0 = arith.constant 0 : index
    %c0_1 = arith.constant 0 : index
    %3 = vector.load %arg8[%c0, %c0_1] : memref<128x32xf32, #tpu.memory_space<vmem>>, vector<128x32xf32>
    %c0_2 = arith.constant 0 : index
    %c0_3 = arith.constant 0 : index
    %4 = vector.load %arg3[%c0_2, %c0_3] : memref<128x16xf32, #tpu.memory_space<vmem>>, vector<128x16xf32>
    %c0_4 = arith.constant 0 : index
    %c0_5 = arith.constant 0 : index
    %5 = vector.load %arg4[%c0_4, %c0_5] : memref<16x32xf32, #tpu.memory_space<vmem>>, vector<16x32xf32>
    %cst = arith.constant dense<0.000000e+00> : vector<128x32xf32>
    %6 = tpu.matmul %4, %5, %cst {dimension_numbers = #tpu.dot_dimension_numbers<[1], [0], [0], [1], [0, 0, 1, 1], [], []>} : vector<128x16xf32>, vector<16x32xf32>, vector<128x32xf32> -> vector<128x32xf32>
    %7 = arith.addf %3, %6 : vector<128x32xf32>
    %c0_6 = arith.constant 0 : index
    %c0_7 = arith.constant 0 : index
    %8 = vector.load %arg8[%c0_6, %c0_7] : memref<128x32xf32, #tpu.memory_space<vmem>>, vector<128x32xf32>
    tpu.vector_store %arg8[%c0_6, %c0_7], %7 {strides = array<i32>} : memref<128x32xf32, #tpu.memory_space<vmem>>, vector<128x32xf32>,
    %c0_i32_8 = arith.constant 0 : i32
    %9 = arith.cmpi eq, %arg2, %c0_i32_8 : i32
    %10 = arith.extui %9 : i1 to i32
    %c0_i32_9 = arith.constant 0 : i32
    %11 = arith.cmpi ne, %10, %c0_i32_9 : i32
    scf.if %11 {
      %c0_10 = arith.constant 0 : index
      %c0_11 = arith.constant 0 : index
      %12 = vector.load %arg8[%c0_10, %c0_11] : memref<128x32xf32, #tpu.memory_space<vmem>>, vector<128x32xf32>
      %c0_12 = arith.constant 0 : index
      %c0_13 = arith.constant 0 : index
      %13 = vector.load %arg5[%c0_12, %c0_13] : memref<1x32xf32, #tpu.memory_space<vmem>>, vector<1x32xf32>
      %14 = vector.broadcast %13 : vector<1x32xf32> to vector<128x32xf32>
      %15 = arith.mulf %12, %14 : vector<128x32xf32>
      %c0_14 = arith.constant 0 : index
      %c0_15 = arith.constant 0 : index
      %16 = vector.load %arg6[%c0_14, %c0_15] : memref<1x32xf32, #tpu.memory_space<vmem>>, vector<1x32xf32>
      %17 = vector.broadcast %16 : vector<1x32xf32> to vector<128x32xf32>
      %18 = arith.addf %15, %17 : vector<128x32xf32>
      %c0_16 = arith.constant 0 : index
      %c0_17 = arith.constant 0 : index
      %19 = vector.load %arg7[%c0_16, %c0_17] : memref<128x32xf32, #tpu.memory_space<vmem>>, vector<128x32xf32>
      tpu.vector_store %arg7[%c0_16, %c0_17], %18 {strides = array<i32>} : memref<128x32xf32, #tpu.memory_space<vmem>>, vector<128x32xf32>,
    } else {
    }
    return
  }
  func.func @transform_0(%arg0: i32, %arg1: i32, %arg2: i32) -> (i32, i32) {
    %c0_i32 = arith.constant 0 : i32
    return %arg0, %arg2 : i32, i32
  }
  func.func @transform_1(%arg0: i32, %arg1: i32, %arg2: i32) -> (i32, i32) {
    %c0_i32 = arith.constant 0 : i32
    return %arg2, %arg1 : i32, i32
  }
  func.func @transform_2(%arg0: i32, %arg1: i32, %arg2: i32) -> (i32, i32) {
    %c0_i32 = arith.constant 0 : i32
    %c0_i32_0 = arith.constant 0 : i32
    return %c0_i32, %arg1 : i32, i32
  }
  func.func @transform_3(%arg0: i32, %arg1: i32, %arg2: i32) -> (i32, i32) {
    %c0_i32 = arith.constant 0 : i32
    %c0_i32_0 = arith.constant 0 : i32
    return %c0_i32, %arg1 : i32, i32
  }
  func.func @transform_4(%arg0: i32, %arg1: i32, %arg2: i32) -> (i32, i32) {
    %c0_i32 = arith.constant 0 : i32
    return %arg0, %arg1 : i32, i32
  }
}

module attributes {stable_mosaic.version = 11 : i64} {
  func.func @_fused_matmul_kernel(%arg0: i32, %arg1: i32, %arg2: i32, %arg3: memref<128x8xf32, #tpu.memory_space<vmem>>, %arg4: memref<8x32xf32, #tpu.memory_space<vmem>>, %arg5: memref<1x32xf32, #tpu.memory_space<vmem>>, %arg6: memref<1x32xf32, #tpu.memory_space<vmem>>, %arg7: memref<128x32xf32, #tpu.memory_space<vmem>>, %arg8: memref<128x32xf32, #tpu.memory_space<vmem>>, %arg9: memref<128x32xf32, #tpu.memory_space<vmem>>) attributes {dimension_semantics = [#tpu.dimension_semantics<parallel>, #tpu.dimension_semantics<parallel>, #tpu.dimension_semantics<arbitrary>], iteration_bounds = array<i64: 1, 1, 1>, scalar_prefetch = 0 : i64, scratch_operands = 1 : i64, tpu.core_type = #tpu.core_type<tc>, window_params = [{transform_indices = @transform_0, window_bounds = array<i64: 128, 8>}, {transform_indices = @transform_1, window_bounds = array<i64: 8, 32>}, {transform_indices = @transform_2, window_bounds = array<i64: 1, 32>}, {transform_indices = @transform_3, window_bounds = array<i64: 1, 32>}, {transform_indices = @transform_4, window_bounds = array<i64: 128, 32>}, {transform_indices = @transform_5, window_bounds = array<i64: 128, 32>}]} {
    %c0_i32 = arith.constant 0 : i32
    %0 = arith.cmpi eq, %arg2, %c0_i32 : i32
    %1 = arith.extui %0 : i1 to i32
    %c0_i32_0 = arith.constant 0 : i32
    %2 = arith.cmpi ne, %1, %c0_i32_0 : i32
    scf.if %2 {
      %cst_10 = arith.constant 0.000000e+00 : f32
      %12 = vector.broadcast %cst_10 : f32 to vector<128x32xf32>
      %c0_11 = arith.constant 0 : index
      %c0_12 = arith.constant 0 : index
      %13 = vector.load %arg9[%c0_11, %c0_12] : memref<128x32xf32, #tpu.memory_space<vmem>>, vector<128x32xf32>
      tpu.vector_store %arg9[%c0_11, %c0_12], %12 {strides = array<i32>} : memref<128x32xf32, #tpu.memory_space<vmem>>, vector<128x32xf32>,
    } else {
    }
    %c0 = arith.constant 0 : index
    %c0_1 = arith.constant 0 : index
    %3 = vector.load %arg9[%c0, %c0_1] : memref<128x32xf32, #tpu.memory_space<vmem>>, vector<128x32xf32>
    %c0_2 = arith.constant 0 : index
    %c0_3 = arith.constant 0 : index
    %4 = vector.load %arg3[%c0_2, %c0_3] : memref<128x8xf32, #tpu.memory_space<vmem>>, vector<128x8xf32>
    %c0_4 = arith.constant 0 : index
    %c0_5 = arith.constant 0 : index
    %5 = vector.load %arg4[%c0_4, %c0_5] : memref<8x32xf32, #tpu.memory_space<vmem>>, vector<8x32xf32>
    %cst = arith.constant dense<0.000000e+00> : vector<128x32xf32>
    %6 = tpu.matmul %4, %5, %cst {dimension_numbers = #tpu.dot_dimension_numbers<[1], [0], [0], [1], [0, 0, 1, 1], [], []>} : vector<128x8xf32>, vector<8x32xf32>, vector<128x32xf32> -> vector<128x32xf32>
    %7 = arith.addf %3, %6 : vector<128x32xf32>
    %c0_6 = arith.constant 0 : index
    %c0_7 = arith.constant 0 : index
    %8 = vector.load %arg9[%c0_6, %c0_7] : memref<128x32xf32, #tpu.memory_space<vmem>>, vector<128x32xf32>
    tpu.vector_store %arg9[%c0_6, %c0_7], %7 {strides = array<i32>} : memref<128x32xf32, #tpu.memory_space<vmem>>, vector<128x32xf32>,
    %c0_i32_8 = arith.constant 0 : i32
    %9 = arith.cmpi eq, %arg2, %c0_i32_8 : i32
    %10 = arith.extui %9 : i1 to i32
    %c0_i32_9 = arith.constant 0 : i32
    %11 = arith.cmpi ne, %10, %c0_i32_9 : i32
    scf.if %11 {
      %c0_10 = arith.constant 0 : index
      %c0_11 = arith.constant 0 : index
      %12 = vector.load %arg9[%c0_10, %c0_11] : memref<128x32xf32, #tpu.memory_space<vmem>>, vector<128x32xf32>
      %c0_12 = arith.constant 0 : index
      %c0_13 = arith.constant 0 : index
      %13 = vector.load %arg5[%c0_12, %c0_13] : memref<1x32xf32, #tpu.memory_space<vmem>>, vector<1x32xf32>
      %14 = vector.broadcast %13 : vector<1x32xf32> to vector<128x32xf32>
      %15 = arith.mulf %12, %14 : vector<128x32xf32>
      %c0_14 = arith.constant 0 : index
      %c0_15 = arith.constant 0 : index
      %16 = vector.load %arg6[%c0_14, %c0_15] : memref<1x32xf32, #tpu.memory_space<vmem>>, vector<1x32xf32>
      %17 = vector.broadcast %16 : vector<1x32xf32> to vector<128x32xf32>
      %18 = arith.addf %15, %17 : vector<128x32xf32>
      %c0_16 = arith.constant 0 : index
      %c0_17 = arith.constant 0 : index
      %19 = vector.load %arg7[%c0_16, %c0_17] : memref<128x32xf32, #tpu.memory_space<vmem>>, vector<128x32xf32>
      %20 = arith.addf %18, %19 : vector<128x32xf32>
      %cst_18 = arith.constant 0.000000e+00 : f32
      %21 = vector.broadcast %cst_18 : f32 to vector<128x32xf32>
      %22 = arith.maximumf %20, %21 : vector<128x32xf32>
      %c0_19 = arith.constant 0 : index
      %c0_20 = arith.constant 0 : index
      %23 = vector.load %arg8[%c0_19, %c0_20] : memref<128x32xf32, #tpu.memory_space<vmem>>, vector<128x32xf32>
      tpu.vector_store %arg8[%c0_19, %c0_20], %22 {strides = array<i32>} : memref<128x32xf32, #tpu.memory_space<vmem>>, vector<128x32xf32>,
    } else {
    }
    return
  }
  func.func @transform_0(%arg0: i32, %arg1: i32, %arg2: i32) -> (i32, i32) {
    %c0_i32 = arith.constant 0 : i32
    return %arg0, %arg2 : i32, i32
  }
  func.func @transform_1(%arg0: i32, %arg1: i32, %arg2: i32) -> (i32, i32) {
    %c0_i32 = arith.constant 0 : i32
    return %arg2, %arg1 : i32, i32
  }
  func.func @transform_2(%arg0: i32, %arg1: i32, %arg2: i32) -> (i32, i32) {
    %c0_i32 = arith.constant 0 : i32
    %c0_i32_0 = arith.constant 0 : i32
    return %c0_i32, %arg1 : i32, i32
  }
  func.func @transform_3(%arg0: i32, %arg1: i32, %arg2: i32) -> (i32, i32) {
    %c0_i32 = arith.constant 0 : i32
    %c0_i32_0 = arith.constant 0 : i32
    return %c0_i32, %arg1 : i32, i32
  }
  func.func @transform_4(%arg0: i32, %arg1: i32, %arg2: i32) -> (i32, i32) {
    %c0_i32 = arith.constant 0 : i32
    return %arg0, %arg1 : i32, i32
  }
  func.func @transform_5(%arg0: i32, %arg1: i32, %arg2: i32) -> (i32, i32) {
    %c0_i32 = arith.constant 0 : i32
    return %arg0, %arg1 : i32, i32
  }
}

</mosaic_0001>

<bundles_post_ra>
// kernel: res_layer_forward.6
= control target key start
LH: loop header
LB: loop body
LE: loop exit
PB: predicated region body
PF: predicated region fallthrough
CT: control target
= control target key end

     0   :  { %vm21_vm0 = vcmask 261120   ;;  %v453_v2 = vmov 0.0   ;;  %vm72_vm1 = vcmask 130048   ;;  %s687_s1 = inlined_call_operand.vmem [shape: f32[16,32], index: 1, kind: input, shape index: {}]   ;;  %s688_s0 = inlined_call_operand.vmem [shape: f32[128,16], index: 0, kind: input, shape index: {}]   ;;  %s689_s2 = inlined_call_operand.vmem [shape: f32[1,32], index: 2, kind: input, shape index: {}]   ;;  %s690_s3 = inlined_call_operand.vmem [shape: f32[1,32], index: 3, kind: input, shape index: {}]   ;;  %s691_s4 = inlined_call_operand.vmem [shape: f32[128,32], index: 4, kind: output, shape index: {}]  }
   0x1   :  { %v71_v0 = vld [vmem:[%s687_s1 + $0x8] sm:$0xff]  ;;  %v70_v1 = vld [vmem:[%s687_s1] sm:$0xff]  ;;  %23 = vst.msk [vmem:[#allocation2 + $0x8] sm:$0xff] %vm21_vm0, %v453_v2  ;;  %22 = vst.msk [vmem:[#allocation2] sm:$0xff] %vm21_vm0, %v453_v2 }
   0x2   :  { %24 = vst.msk [vmem:[#allocation2 + $0x10] sm:$0xff] %vm21_vm0, %v453_v2  ;;  %25 = vst.msk [vmem:[#allocation2 + $0x18] sm:$0xff] %vm21_vm0, %v453_v2  ;;  %420 = vmatprep.subr.mxu0 %v71_v0  ;;  %448 = vmatprep.subr.mxu1 %v71_v0  ;;  %v54_v3 = vld [vmem:[%s688_s0] sm:$0xff]  ;;  %v55_v5 = vld [vmem:[%s688_s0 + $0x8] sm:$0xff] }
   0x3   :  { %26 = vst.msk [vmem:[#allocation2 + $0x20] sm:$0xff] %vm21_vm0, %v453_v2  ;;  %27 = vst.msk [vmem:[#allocation2 + $0x28] sm:$0xff] %vm21_vm0, %v453_v2  ;;  %421 = vmatpush3.msra.mxu0 %v71_v0  ;;  %450 = vmatpush3.msra.mxu1 %v71_v0  ;;  %v62_v4 = vld [vmem:[%s688_s0 + $0x40] sm:$0xff]  ;;  %v63_v6 = vld [vmem:[%s688_s0 + $0x48] sm:$0xff] }
   0x4   :  { %28 = vst.msk [vmem:[#allocation2 + $0x30] sm:$0xff] %vm21_vm0, %v453_v2  ;;  %29 = vst.msk [vmem:[#allocation2 + $0x38] sm:$0xff] %vm21_vm0, %v453_v2  ;;  %422 = vmatprep.subr.mxu0 %v70_v1  ;;  %449 = vmatprep.subr.mxu1 %v70_v1  ;;  %v56_v7 = vld [vmem:[%s688_s0 + $0x10] sm:$0xff]  ;;  %v57_v9 = vld [vmem:[%s688_s0 + $0x18] sm:$0xff] }
   0x5   :  { %30 = vst.msk [vmem:[#allocation2 + $0x40] sm:$0xff] %vm21_vm0, %v453_v2  ;;  %31 = vst.msk [vmem:[#allocation2 + $0x48] sm:$0xff] %vm21_vm0, %v453_v2  ;;  %423 = vmatpush3.msra.mxu0 %v70_v1  ;;  %451 = vmatpush3.msra.mxu1 %v70_v1  ;;  %v64_v8 = vld [vmem:[%s688_s0 + $0x50] sm:$0xff]  ;;  %v65_v10 = vld [vmem:[%s688_s0 + $0x58] sm:$0xff] }
   0x6   :  { %32 = vst.msk [vmem:[#allocation2 + $0x50] sm:$0xff] %vm21_vm0, %v453_v2  ;;  %33 = vst.msk [vmem:[#allocation2 + $0x58] sm:$0xff] %vm21_vm0, %v453_v2  ;;  %424 = vmatprep.mubr.msk.f32.mxu0 %vm72_vm1, %v54_v3  ;;  %436 = vmatprep.mubr.msk.f32.mxu1 %vm72_vm1, %v62_v4  ;;  %v58_v11 = vld [vmem:[%s688_s0 + $0x20] sm:$0xff]  ;;  %v59_v13 = vld [vmem:[%s688_s0 + $0x28] sm:$0xff] }
   0x7   :  { %34 = vst.msk [vmem:[#allocation2 + $0x60] sm:$0xff] %vm21_vm0, %v453_v2  ;;  %35 = vst.msk [vmem:[#allocation2 + $0x68] sm:$0xff] %vm21_vm0, %v453_v2  ;;  %425 = vmatmul.mubr.msk.f32.vlgmr.msra.gmra.mxu0 %vm72_vm1, %v55_v5  ;;  %437 = vmatmul.mubr.msk.f32.vlgmr.msra.gmra.mxu1 %vm72_vm1, %v63_v6  ;;  %v66_v12 = vld [vmem:[%s688_s0 + $0x60] sm:$0xff]  ;;  %v67_v14 = vld [vmem:[%s688_s0 + $0x68] sm:$0xff] }
   0x8   :  { %36 = vst.msk [vmem:[#allocation2 + $0x70] sm:$0xff] %vm21_vm0, %v453_v2  ;;  %37 = vst.msk [vmem:[#allocation2 + $0x78] sm:$0xff] %vm21_vm0, %v453_v2  ;;  %427 = vmatprep.mubr.msk.f32.mxu0 %vm72_vm1, %v56_v7  ;;  %439 = vmatprep.mubr.msk.f32.mxu1 %vm72_vm1, %v64_v8  ;;  %v60_v15 = vld [vmem:[%s688_s0 + $0x30] sm:$0xff]  ;;  %v61_v17 = vld [vmem:[%s688_s0 + $0x38] sm:$0xff] }
   0x9   :  { %v68_v16 = vld [vmem:[%s688_s0 + $0x70] sm:$0xff]  ;;  %v69_v18 = vld [vmem:[%s688_s0 + $0x78] sm:$0xff]  ;;  %v39_v19 = vld [vmem:[#allocation2 + $0x8] sm:$0xff] }
   0xa   :  { %v38_v23 = vld [vmem:[#allocation2] sm:$0xff]  ;;  %v41_v29 = vld [vmem:[#allocation2 + $0x18] sm:$0xff]  ;;  %v40_v35 = vld [vmem:[#allocation2 + $0x10] sm:$0xff] }
   0xb   :  { %428 = vmatmul.mubr.msk.f32.gmra.mxu0 %vm72_vm1, %v57_v9  ;;  %440 = vmatmul.mubr.msk.f32.gmra.mxu1 %vm72_vm1, %v65_v10  ;;  %v43_v41 = vld [vmem:[#allocation2 + $0x28] sm:$0xff]  ;;  %v574_v45 = vld [vmem:[%s689_s2] ss:$0 sm:$0xff]  ;;  %v45_v61 = vld [vmem:[#allocation2 + $0x38] sm:$0xff] }
   0xc   :  { %430 = vmatprep.mubr.msk.f32.mxu0 %vm72_vm1, %v58_v11  ;;  %442 = vmatprep.mubr.msk.f32.mxu1 %vm72_vm1, %v66_v12  ;;  %v47_v20 = vld [vmem:[#allocation2 + $0x48] sm:$0xff]  ;;  %v46_v24 = vld [vmem:[#allocation2 + $0x40] sm:$0xff]  ;;  %v44_v7 = vld [vmem:[#allocation2 + $0x30] sm:$0xff] }
   0xd   :  { %v49_v30 = vld [vmem:[#allocation2 + $0x58] sm:$0xff]  ;;  %v48_v36 = vld [vmem:[#allocation2 + $0x50] sm:$0xff]  ;;  %v42_v48 = vld [vmem:[#allocation2 + $0x20] sm:$0xff] }
   0xe   :  { %v51_v42 = vld [vmem:[#allocation2 + $0x68] sm:$0xff]  ;;  %v50_v49 = vld [vmem:[#allocation2 + $0x60] sm:$0xff] }
   0xf   :  { %431 = vmatmul.mubr.msk.f32.gmra.mxu0 %vm72_vm1, %v59_v13  ;;  %443 = vmatmul.mubr.msk.f32.gmra.mxu1 %vm72_vm1, %v67_v14  ;;  %v581_v53 = vld [vmem:[%s690_s3] ss:$0 sm:$0xff]  ;;  %v53_v62 = vld [vmem:[#allocation2 + $0x78] sm:$0xff]  ;;  %v52_v8 = vld [vmem:[#allocation2 + $0x70] sm:$0xff] }
  0x10   :  { %433 = vmatprep.mubr.msk.f32.mxu0 %vm72_vm1, %v60_v15  ;;  %445 = vmatprep.mubr.msk.f32.mxu1 %vm72_vm1, %v68_v16 }
  0x13   :  { %434 = vmatmul.mubr.msk.f32.gmra.mxu0 %vm72_vm1, %v61_v17  ;;  %446 = vmatmul.mubr.msk.f32.gmra.mxu1 %vm72_vm1, %v69_v18 }
  0xc7   :  { %v426_v21 = vpop.f32.mrf.mxu0  ;;  %v438_v22 = vpop.f32.mrf.mxu1 }
  0xc8   :  { %v267_v25 = vadd.f32 %v426_v21, %v39_v19  ;;  %v275_v26 = vadd.f32 %v438_v22, %v47_v20 }
  0xc9   :  { %v187_v27 = vpop.f32.mrf.mxu0  ;;  %v227_v28 = vpop.f32.mrf.mxu1 }
  0xca   :  { %284 = vst.msk [vmem:[#allocation2 + $0x8] sm:$0xff] %vm21_vm0, %v267_v25  ;;  %292 = vst.msk [vmem:[#allocation2 + $0x48] sm:$0xff] %vm21_vm0, %v275_v26  ;;  %v266_v31 = vadd.f32 %v187_v27, %v38_v23  ;;  %v274_v32 = vadd.f32 %v227_v28, %v46_v24 }
  0xcb   :  { %v429_v33 = vpop.f32.mrf.mxu0  ;;  %v441_v34 = vpop.f32.mrf.mxu1 }
  0xcc   :  { %283 = vst.msk [vmem:[#allocation2] sm:$0xff] %vm21_vm0, %v266_v31  ;;  %291 = vst.msk [vmem:[#allocation2 + $0x40] sm:$0xff] %vm21_vm0, %v274_v32  ;;  %v269_v37 = vadd.f32 %v429_v33, %v41_v29  ;;  %v277_v38 = vadd.f32 %v441_v34, %v49_v30 }
  0xcd   :  { %v197_v39 = vpop.f32.mrf.mxu0  ;;  %v237_v40 = vpop.f32.mrf.mxu1 }
  0xce   :  { %286 = vst.msk [vmem:[#allocation2 + $0x18] sm:$0xff] %vm21_vm0, %v269_v37  ;;  %294 = vst.msk [vmem:[#allocation2 + $0x58] sm:$0xff] %vm21_vm0, %v277_v38  ;;  %v268_v43 = vadd.f32 %v197_v39, %v40_v35  ;;  %v276_v44 = vadd.f32 %v237_v40, %v48_v36 }
  0xcf   :  { %v432_v46 = vpop.f32.mrf.mxu0  ;;  %v444_v47 = vpop.f32.mrf.mxu1 }
  0xd0   :  { %285 = vst.msk [vmem:[#allocation2 + $0x10] sm:$0xff] %vm21_vm0, %v268_v43  ;;  %293 = vst.msk [vmem:[#allocation2 + $0x50] sm:$0xff] %vm21_vm0, %v276_v44  ;;  %v271_v50 = vadd.f32 %v432_v46, %v43_v41  ;;  %v279_v51 = vadd.f32 %v444_v47, %v51_v42 }
  0xd1   :  { %v303_v52 = vld [vmem:[#allocation2 + $0x8] sm:$0xff]  ;;  %v207_v55 = vpop.f32.mrf.mxu0  ;;  %v247_v56 = vpop.f32.mrf.mxu1 }
  0xd2   :  { %v311_v54 = vld [vmem:[#allocation2 + $0x48] sm:$0xff]  ;;  %v326_v57 = vmul.f32 %v574_v45, %v303_v52  ;;  %288 = vst.msk [vmem:[#allocation2 + $0x28] sm:$0xff] %vm21_vm0, %v271_v50  ;;  %296 = vst.msk [vmem:[#allocation2 + $0x68] sm:$0xff] %vm21_vm0, %v279_v51  ;;  %v270_v59 = vadd.f32 %v207_v55, %v42_v48  ;;  %v278_v60 = vadd.f32 %v247_v56, %v50_v49 }
  0xd3   :  { %v334_v58 = vmul.f32 %v574_v45, %v311_v54  ;;  %v302_v63 = vld [vmem:[#allocation2] sm:$0xff]  ;;  %v435_v1 = vpop.f32.mrf.mxu0  ;;  %v447_v2 = vpop.f32.mrf.mxu1 }
  0xd4   :  { %v310_v0 = vld [vmem:[#allocation2 + $0x40] sm:$0xff]  ;;  %v349_v3 = vadd.f32 %v581_v53, %v326_v57  ;;  %v325_v5 = vmul.f32 %v574_v45, %v302_v63  ;;  %287 = vst.msk [vmem:[#allocation2 + $0x20] sm:$0xff] %vm21_vm0, %v270_v59  ;;  %295 = vst.msk [vmem:[#allocation2 + $0x60] sm:$0xff] %vm21_vm0, %v278_v60  ;;  %v273_v11 = vadd.f32 %v435_v1, %v45_v61 }
  0xd5   :  { %v357_v4 = vadd.f32 %v581_v53, %v334_v58  ;;  %v333_v6 = vmul.f32 %v574_v45, %v310_v0  ;;  %v305_v9 = vld [vmem:[#allocation2 + $0x18] sm:$0xff]  ;;  %v281_v12 = vadd.f32 %v447_v2, %v53_v62  ;;  %v217_v13 = vpop.f32.mrf.mxu0  ;;  %v257_v14 = vpop.f32.mrf.mxu1 }
  0xd6   :  { %v313_v10 = vld [vmem:[#allocation2 + $0x58] sm:$0xff]  ;;  %365 = vst.msk [vmem:[%s691_s4 + $0x8] sm:$0xff] %vm21_vm0, %v349_v3  ;;  %v348_v15 = vadd.f32 %v581_v53, %v325_v5  ;;  %v328_v17 = vmul.f32 %v574_v45, %v305_v9  ;;  %290 = vst.msk [vmem:[#allocation2 + $0x38] sm:$0xff] %vm21_vm0, %v273_v11  ;;  %v272_v21 = vadd.f32 %v217_v13, %v44_v7 }
  0xd7   :  { %373 = vst.msk [vmem:[%s691_s4 + $0x48] sm:$0xff] %vm21_vm0, %v357_v4  ;;  %v356_v16 = vadd.f32 %v581_v53, %v333_v6  ;;  %v336_v18 = vmul.f32 %v574_v45, %v313_v10  ;;  %v304_v19 = vld [vmem:[#allocation2 + $0x10] sm:$0xff]  ;;  %298 = vst.msk [vmem:[#allocation2 + $0x78] sm:$0xff] %vm21_vm0, %v281_v12  ;;  %v280_v22 = vadd.f32 %v257_v14, %v52_v8 }
  0xd8   :  { %v312_v20 = vld [vmem:[#allocation2 + $0x50] sm:$0xff]  ;;  %364 = vst.msk [vmem:[%s691_s4] sm:$0xff] %vm21_vm0, %v348_v15  ;;  %v351_v23 = vadd.f32 %v581_v53, %v328_v17  ;;  %v327_v25 = vmul.f32 %v574_v45, %v304_v19  ;;  %289 = vst.msk [vmem:[#allocation2 + $0x30] sm:$0xff] %vm21_vm0, %v272_v21 }
  0xd9   :  { %372 = vst.msk [vmem:[%s691_s4 + $0x40] sm:$0xff] %vm21_vm0, %v356_v16  ;;  %v359_v24 = vadd.f32 %v581_v53, %v336_v18  ;;  %v335_v26 = vmul.f32 %v574_v45, %v312_v20  ;;  %v307_v27 = vld [vmem:[#allocation2 + $0x28] sm:$0xff]  ;;  %297 = vst.msk [vmem:[#allocation2 + $0x70] sm:$0xff] %vm21_vm0, %v280_v22 }
  0xda   :  { %v315_v28 = vld [vmem:[#allocation2 + $0x68] sm:$0xff]  ;;  %367 = vst.msk [vmem:[%s691_s4 + $0x18] sm:$0xff] %vm21_vm0, %v351_v23  ;;  %v350_v29 = vadd.f32 %v581_v53, %v327_v25  ;;  %v330_v31 = vmul.f32 %v574_v45, %v307_v27 }
  0xdb   :  { %375 = vst.msk [vmem:[%s691_s4 + $0x58] sm:$0xff] %vm21_vm0, %v359_v24  ;;  %v358_v30 = vadd.f32 %v581_v53, %v335_v26  ;;  %v338_v32 = vmul.f32 %v574_v45, %v315_v28  ;;  %v306_v33 = vld [vmem:[#allocation2 + $0x20] sm:$0xff] }
  0xdc   :  { %v314_v34 = vld [vmem:[#allocation2 + $0x60] sm:$0xff]  ;;  %366 = vst.msk [vmem:[%s691_s4 + $0x10] sm:$0xff] %vm21_vm0, %v350_v29  ;;  %v353_v35 = vadd.f32 %v581_v53, %v330_v31  ;;  %v329_v37 = vmul.f32 %v574_v45, %v306_v33 }
  0xdd   :  { %374 = vst.msk [vmem:[%s691_s4 + $0x50] sm:$0xff] %vm21_vm0, %v358_v30  ;;  %v361_v36 = vadd.f32 %v581_v53, %v338_v32  ;;  %v337_v38 = vmul.f32 %v574_v45, %v314_v34  ;;  %v309_v41 = vld [vmem:[#allocation2 + $0x38] sm:$0xff] }
  0xde   :  { %369 = vst.msk [vmem:[%s691_s4 + $0x28] sm:$0xff] %vm21_vm0, %v353_v35  ;;  %v352_v39 = vadd.f32 %v581_v53, %v329_v37  ;;  %v317_v42 = vld [vmem:[#allocation2 + $0x78] sm:$0xff]  ;;  %v332_v43 = vmul.f32 %v574_v45, %v309_v41 }
  0xdf   :  { %377 = vst.msk [vmem:[%s691_s4 + $0x68] sm:$0xff] %vm21_vm0, %v361_v36  ;;  %v360_v40 = vadd.f32 %v581_v53, %v337_v38  ;;  %v340_v44 = vmul.f32 %v574_v45, %v317_v42  ;;  %v308_v46 = vld [vmem:[#allocation2 + $0x30] sm:$0xff] }
  0xe0   :  { %368 = vst.msk [vmem:[%s691_s4 + $0x20] sm:$0xff] %vm21_vm0, %v352_v39  ;;  %v316_v47 = vld [vmem:[#allocation2 + $0x70] sm:$0xff]  ;;  %v355_v48 = vadd.f32 %v581_v53, %v332_v43  ;;  %v331_v50 = vmul.f32 %v574_v45, %v308_v46 }
  0xe1   :  { %376 = vst.msk [vmem:[%s691_s4 + $0x60] sm:$0xff] %vm21_vm0, %v360_v40  ;;  %v363_v49 = vadd.f32 %v581_v53, %v340_v44  ;;  %v339_v51 = vmul.f32 %v574_v45, %v316_v47 }
  0xe2   :  { %371 = vst.msk [vmem:[%s691_s4 + $0x38] sm:$0xff] %vm21_vm0, %v355_v48  ;;  %v354_v52 = vadd.f32 %v581_v53, %v331_v50 }
  0xe3   :  { %379 = vst.msk [vmem:[%s691_s4 + $0x78] sm:$0xff] %vm21_vm0, %v363_v49  ;;  %v362_v54 = vadd.f32 %v581_v53, %v339_v51 }
  0xe4   :  { %370 = vst.msk [vmem:[%s691_s4 + $0x30] sm:$0xff] %vm21_vm0, %v354_v52 }
  0xe5   :  { %378 = vst.msk [vmem:[%s691_s4 + $0x70] sm:$0xff] %vm21_vm0, %v362_v54 }

// kernel: res_layer_forward.5
= control target key start
LH: loop header
LB: loop body
LE: loop exit
PB: predicated region body
PF: predicated region fallthrough
CT: control target
= control target key end

     0   :  { %vm21_vm0 = vcmask 64512   ;;  %v511_v2 = vmov 0.0   ;;  %vm79_vm1 = vcmask 588800   ;;  %s766_s1 = inlined_call_operand.vmem [shape: f32[72,8], index: 1, kind: input, shape index: {}]   ;;  %s767_s0 = inlined_call_operand.vmem [shape: f32[128,72], index: 0, kind: input, shape index: {}]   ;;  %s768_s2 = inlined_call_operand.vmem [shape: f32[1,8], index: 2, kind: input, shape index: {}]   ;;  %s769_s3 = inlined_call_operand.vmem [shape: f32[1,8], index: 3, kind: input, shape index: {}]   ;;  %s770_s4 = inlined_call_operand.vmem [shape: f32[128,8], index: 4, kind: output, shape index: {}]  }
   0x1   :  { %v78_v0 = vld [vmem:[%s766_s1 + $0x40] sm:$0xff]  ;;  %v77_v1 = vld [vmem:[%s766_s1 + $0x38] sm:$0xff]  ;;  %23 = vst.msk [vmem:[#allocation2 + $0x8] sm:$0xff] %vm21_vm0, %v511_v2  ;;  %22 = vst.msk [vmem:[#allocation2] sm:$0xff] %vm21_vm0, %v511_v2 }
   0x2   :  { %24 = vst.msk [vmem:[#allocation2 + $0x10] sm:$0xff] %vm21_vm0, %v511_v2  ;;  %25 = vst.msk [vmem:[#allocation2 + $0x18] sm:$0xff] %vm21_vm0, %v511_v2  ;;  %450 = vmatprep.subr.mxu0 %v78_v0  ;;  %492 = vmatprep.subr.mxu1 %v78_v0  ;;  %v76_v3 = vld [vmem:[%s766_s1 + $0x30] sm:$0xff]  ;;  %v75_v4 = vld [vmem:[%s766_s1 + $0x28] sm:$0xff] }
   0x3   :  { %26 = vst.msk [vmem:[#allocation2 + $0x20] sm:$0xff] %vm21_vm0, %v511_v2  ;;  %27 = vst.msk [vmem:[#allocation2 + $0x28] sm:$0xff] %vm21_vm0, %v511_v2  ;;  %451 = vmatpush3.msra.mxu0 %v78_v0  ;;  %501 = vmatpush3.msra.mxu1 %v78_v0  ;;  %v74_v5 = vld [vmem:[%s766_s1 + $0x20] sm:$0xff]  ;;  %v73_v6 = vld [vmem:[%s766_s1 + $0x18] sm:$0xff] }
   0x4   :  { %28 = vst.msk [vmem:[#allocation2 + $0x30] sm:$0xff] %vm21_vm0, %v511_v2  ;;  %29 = vst.msk [vmem:[#allocation2 + $0x38] sm:$0xff] %vm21_vm0, %v511_v2  ;;  %452 = vmatprep.subr.mxu0 %v77_v1  ;;  %493 = vmatprep.subr.mxu1 %v77_v1  ;;  %v72_v7 = vld [vmem:[%s766_s1 + $0x10] sm:$0xff]  ;;  %v71_v8 = vld [vmem:[%s766_s1 + $0x8] sm:$0xff] }
   0x5   :  { %30 = vst.msk [vmem:[#allocation2 + $0x40] sm:$0xff] %vm21_vm0, %v511_v2  ;;  %31 = vst.msk [vmem:[#allocation2 + $0x48] sm:$0xff] %vm21_vm0, %v511_v2  ;;  %453 = vmatpush3.msra.mxu0 %v77_v1  ;;  %502 = vmatpush3.msra.mxu1 %v77_v1  ;;  %v70_v9 = vld [vmem:[%s766_s1] sm:$0xff]  ;;  %v55_v12 = vld [vmem:[%s767_s0 + $0x8] sm:$0xff] }
   0x6   :  { %32 = vst.msk [vmem:[#allocation2 + $0x50] sm:$0xff] %vm21_vm0, %v511_v2  ;;  %33 = vst.msk [vmem:[#allocation2 + $0x58] sm:$0xff] %vm21_vm0, %v511_v2  ;;  %454 = vmatprep.subr.mxu0 %v76_v3  ;;  %494 = vmatprep.subr.mxu1 %v76_v3  ;;  %v54_v10 = vld [vmem:[%s767_s0] sm:$0xff]  ;;  %v63_v13 = vld [vmem:[%s767_s0 + $0x48] sm:$0xff] }
   0x7   :  { %34 = vst.msk [vmem:[#allocation2 + $0x60] sm:$0xff] %vm21_vm0, %v511_v2  ;;  %35 = vst.msk [vmem:[#allocation2 + $0x68] sm:$0xff] %vm21_vm0, %v511_v2  ;;  %455 = vmatpush3.msra.mxu0 %v76_v3  ;;  %503 = vmatpush3.msra.mxu1 %v76_v3  ;;  %v62_v11 = vld [vmem:[%s767_s0 + $0x40] sm:$0xff]  ;;  %v56_v14 = vld [vmem:[%s767_s0 + $0x10] sm:$0xff] }
   0x8   :  { %36 = vst.msk [vmem:[#allocation2 + $0x70] sm:$0xff] %vm21_vm0, %v511_v2  ;;  %37 = vst.msk [vmem:[#allocation2 + $0x78] sm:$0xff] %vm21_vm0, %v511_v2  ;;  %456 = vmatprep.subr.mxu0 %v75_v4  ;;  %495 = vmatprep.subr.mxu1 %v75_v4  ;;  %v64_v15 = vld [vmem:[%s767_s0 + $0x50] sm:$0xff]  ;;  %v57_v16 = vld [vmem:[%s767_s0 + $0x18] sm:$0xff] }
   0x9   :  { %457 = vmatpush3.msra.mxu0 %v75_v4  ;;  %504 = vmatpush3.msra.mxu1 %v75_v4  ;;  %v65_v17 = vld [vmem:[%s767_s0 + $0x58] sm:$0xff]  ;;  %v58_v18 = vld [vmem:[%s767_s0 + $0x20] sm:$0xff]  ;;  %v59_v20 = vld [vmem:[%s767_s0 + $0x28] sm:$0xff] }
   0xa   :  { %458 = vmatprep.subr.mxu0 %v74_v5  ;;  %496 = vmatprep.subr.mxu1 %v74_v5  ;;  %v66_v19 = vld [vmem:[%s767_s0 + $0x60] sm:$0xff]  ;;  %v67_v21 = vld [vmem:[%s767_s0 + $0x68] sm:$0xff]  ;;  %v60_v22 = vld [vmem:[%s767_s0 + $0x30] sm:$0xff] }
   0xb   :  { %459 = vmatpush3.msra.mxu0 %v74_v5  ;;  %505 = vmatpush3.msra.mxu1 %v74_v5  ;;  %v68_v23 = vld [vmem:[%s767_s0 + $0x70] sm:$0xff]  ;;  %v61_v24 = vld [vmem:[%s767_s0 + $0x38] sm:$0xff]  ;;  %v39_v26 = vld [vmem:[#allocation2 + $0x8] sm:$0xff] }
   0xc   :  { %460 = vmatprep.subr.mxu0 %v73_v6  ;;  %497 = vmatprep.subr.mxu1 %v73_v6  ;;  %v69_v25 = vld [vmem:[%s767_s0 + $0x78] sm:$0xff]  ;;  %v47_v27 = vld [vmem:[#allocation2 + $0x48] sm:$0xff]  ;;  %v38_v30 = vld [vmem:[#allocation2] sm:$0xff] }
   0xd   :  { %461 = vmatpush3.msra.mxu0 %v73_v6  ;;  %506 = vmatpush3.msra.mxu1 %v73_v6  ;;  %v46_v31 = vld [vmem:[#allocation2 + $0x40] sm:$0xff]  ;;  %v41_v36 = vld [vmem:[#allocation2 + $0x18] sm:$0xff]  ;;  %v40_v42 = vld [vmem:[#allocation2 + $0x10] sm:$0xff] }
   0xe   :  { %462 = vmatprep.subr.mxu0 %v72_v7  ;;  %498 = vmatprep.subr.mxu1 %v72_v7  ;;  %v49_v37 = vld [vmem:[#allocation2 + $0x58] sm:$0xff]  ;;  %v48_v43 = vld [vmem:[#allocation2 + $0x50] sm:$0xff]  ;;  %v43_v48 = vld [vmem:[#allocation2 + $0x28] sm:$0xff] }
   0xf   :  { %463 = vmatpush3.msra.mxu0 %v72_v7  ;;  %507 = vmatpush3.msra.mxu1 %v72_v7  ;;  %v51_v49 = vld [vmem:[#allocation2 + $0x68] sm:$0xff]  ;;  %v653_v52 = vld [vmem:[%s768_s2] ss:$0 sm:$0xff]  ;;  %v45_v4 = vld [vmem:[#allocation2 + $0x38] sm:$0xff] }
  0x10   :  { %464 = vmatprep.subr.mxu0 %v71_v8  ;;  %499 = vmatprep.subr.mxu1 %v71_v8  ;;  %v42_v55 = vld [vmem:[#allocation2 + $0x20] sm:$0xff]  ;;  %v53_v5 = vld [vmem:[#allocation2 + $0x78] sm:$0xff] }
  0x11   :  { %465 = vmatpush3.msra.mxu0 %v71_v8  ;;  %508 = vmatpush3.msra.mxu1 %v71_v8  ;;  %v50_v56 = vld [vmem:[#allocation2 + $0x60] sm:$0xff] }
  0x12   :  { %466 = vmatprep.subr.mxu0 %v70_v9  ;;  %500 = vmatprep.subr.mxu1 %v70_v9  ;;  %v660_v60 = vld [vmem:[%s769_s3] ss:$0 sm:$0xff] }
  0x13   :  { %467 = vmatpush3.msra.mxu0 %v70_v9  ;;  %509 = vmatpush3.msra.mxu1 %v70_v9 }
  0x14   :  { %468 = vmatprep.mubr.msk.f32.mxu0 %vm79_vm1, %v54_v10  ;;  %480 = vmatprep.mubr.msk.f32.mxu1 %vm79_vm1, %v62_v11 }
  0x15   :  { %469 = vmatmul.mubr.msk.f32.vlgmr.msra.gmra.mxu0 %vm79_vm1, %v55_v12  ;;  %481 = vmatmul.mubr.msk.f32.vlgmr.msra.gmra.mxu1 %vm79_vm1, %v63_v13 }
  0x16   :  { %471 = vmatprep.mubr.msk.f32.mxu0 %vm79_vm1, %v56_v14  ;;  %483 = vmatprep.mubr.msk.f32.mxu1 %vm79_vm1, %v64_v15  ;;  %v44_v14 = vld [vmem:[#allocation2 + $0x30] sm:$0xff] }
  0x17   :  { %v52_v15 = vld [vmem:[#allocation2 + $0x70] sm:$0xff] }
  0x19   :  { %472 = vmatmul.mubr.msk.f32.gmra.mxu0 %vm79_vm1, %v57_v16  ;;  %484 = vmatmul.mubr.msk.f32.gmra.mxu1 %vm79_vm1, %v65_v17 }
  0x1a   :  { %474 = vmatprep.mubr.msk.f32.mxu0 %vm79_vm1, %v58_v18  ;;  %486 = vmatprep.mubr.msk.f32.mxu1 %vm79_vm1, %v66_v19 }
  0x1d   :  { %475 = vmatmul.mubr.msk.f32.gmra.mxu0 %vm79_vm1, %v59_v20  ;;  %487 = vmatmul.mubr.msk.f32.gmra.mxu1 %vm79_vm1, %v67_v21 }
  0x1e   :  { %477 = vmatprep.mubr.msk.f32.mxu0 %vm79_vm1, %v60_v22  ;;  %489 = vmatprep.mubr.msk.f32.mxu1 %vm79_vm1, %v68_v23 }
  0x21   :  { %478 = vmatmul.mubr.msk.f32.gmra.mxu0 %vm79_vm1, %v61_v24  ;;  %490 = vmatmul.mubr.msk.f32.gmra.mxu1 %vm79_vm1, %v69_v25 }
  0xd5   :  { %v470_v28 = vpop.f32.mrf.mxu0  ;;  %v482_v29 = vpop.f32.mrf.mxu1 }
  0xd6   :  { %v274_v32 = vadd.f32 %v470_v28, %v39_v26  ;;  %v282_v33 = vadd.f32 %v482_v29, %v47_v27 }
  0xd7   :  { %v194_v34 = vpop.f32.mrf.mxu0  ;;  %v234_v35 = vpop.f32.mrf.mxu1 }
  0xd8   :  { %291 = vst.msk [vmem:[#allocation2 + $0x8] sm:$0xff] %vm21_vm0, %v274_v32  ;;  %299 = vst.msk [vmem:[#allocation2 + $0x48] sm:$0xff] %vm21_vm0, %v282_v33  ;;  %v273_v38 = vadd.f32 %v194_v34, %v38_v30  ;;  %v281_v39 = vadd.f32 %v234_v35, %v46_v31 }
  0xd9   :  { %v473_v40 = vpop.f32.mrf.mxu0  ;;  %v485_v41 = vpop.f32.mrf.mxu1 }
  0xda   :  { %290 = vst.msk [vmem:[#allocation2] sm:$0xff] %vm21_vm0, %v273_v38  ;;  %298 = vst.msk [vmem:[#allocation2 + $0x40] sm:$0xff] %vm21_vm0, %v281_v39  ;;  %v276_v44 = vadd.f32 %v473_v40, %v41_v36  ;;  %v284_v45 = vadd.f32 %v485_v41, %v49_v37 }
  0xdb   :  { %v204_v46 = vpop.f32.mrf.mxu0  ;;  %v244_v47 = vpop.f32.mrf.mxu1 }
  0xdc   :  { %293 = vst.msk [vmem:[#allocation2 + $0x18] sm:$0xff] %vm21_vm0, %v276_v44  ;;  %301 = vst.msk [vmem:[#allocation2 + $0x58] sm:$0xff] %vm21_vm0, %v284_v45  ;;  %v275_v50 = vadd.f32 %v204_v46, %v40_v42  ;;  %v283_v51 = vadd.f32 %v244_v47, %v48_v43 }
  0xdd   :  { %v476_v53 = vpop.f32.mrf.mxu0  ;;  %v488_v54 = vpop.f32.mrf.mxu1 }
  0xde   :  { %292 = vst.msk [vmem:[#allocation2 + $0x10] sm:$0xff] %vm21_vm0, %v275_v50  ;;  %300 = vst.msk [vmem:[#allocation2 + $0x50] sm:$0xff] %vm21_vm0, %v283_v51  ;;  %v278_v57 = vadd.f32 %v476_v53, %v43_v48  ;;  %v286_v58 = vadd.f32 %v488_v54, %v51_v49 }
  0xdf   :  { %v310_v59 = vld [vmem:[#allocation2 + $0x8] sm:$0xff]  ;;  %v214_v62 = vpop.f32.mrf.mxu0  ;;  %v254_v63 = vpop.f32.mrf.mxu1 }
  0xe0   :  { %v318_v61 = vld [vmem:[#allocation2 + $0x48] sm:$0xff]  ;;  %v333_v0 = vmul.f32 %v653_v52, %v310_v59  ;;  %295 = vst.msk [vmem:[#allocation2 + $0x28] sm:$0xff] %vm21_vm0, %v278_v57  ;;  %303 = vst.msk [vmem:[#allocation2 + $0x68] sm:$0xff] %vm21_vm0, %v286_v58  ;;  %v277_v2 = vadd.f32 %v214_v62, %v42_v55  ;;  %v285_v3 = vadd.f32 %v254_v63, %v50_v56 }
  0xe1   :  { %v341_v1 = vmul.f32 %v653_v52, %v318_v61  ;;  %v309_v6 = vld [vmem:[#allocation2] sm:$0xff]  ;;  %v479_v8 = vpop.f32.mrf.mxu0  ;;  %v491_v9 = vpop.f32.mrf.mxu1 }
  0xe2   :  { %v317_v7 = vld [vmem:[#allocation2 + $0x40] sm:$0xff]  ;;  %v356_v10 = vadd.f32 %v660_v60, %v333_v0  ;;  %v332_v12 = vmul.f32 %v653_v52, %v309_v6  ;;  %294 = vst.msk [vmem:[#allocation2 + $0x20] sm:$0xff] %vm21_vm0, %v277_v2  ;;  %302 = vst.msk [vmem:[#allocation2 + $0x60] sm:$0xff] %vm21_vm0, %v285_v3  ;;  %v280_v18 = vadd.f32 %v479_v8, %v45_v4 }
  0xe3   :  { %v364_v11 = vadd.f32 %v660_v60, %v341_v1  ;;  %v340_v13 = vmul.f32 %v653_v52, %v317_v7  ;;  %v312_v16 = vld [vmem:[#allocation2 + $0x18] sm:$0xff]  ;;  %v288_v19 = vadd.f32 %v491_v9, %v53_v5  ;;  %v224_v20 = vpop.f32.mrf.mxu0  ;;  %v264_v21 = vpop.f32.mrf.mxu1 }
  0xe4   :  { %v320_v17 = vld [vmem:[#allocation2 + $0x58] sm:$0xff]  ;;  %v372_v22 = vmax.f32 %v356_v10, 0.0  ;;  %v355_v24 = vadd.f32 %v660_v60, %v332_v12  ;;  %v335_v26 = vmul.f32 %v653_v52, %v312_v16  ;;  %297 = vst.msk [vmem:[#allocation2 + $0x38] sm:$0xff] %vm21_vm0, %v280_v18  ;;  %v279_v30 = vadd.f32 %v224_v20, %v44_v14 }
  0xe5   :  { %v380_v23 = vmax.f32 %v364_v11, 0.0  ;;  %v363_v25 = vadd.f32 %v660_v60, %v340_v13  ;;  %v343_v27 = vmul.f32 %v653_v52, %v320_v17  ;;  %v311_v28 = vld [vmem:[#allocation2 + $0x10] sm:$0xff]  ;;  %305 = vst.msk [vmem:[#allocation2 + $0x78] sm:$0xff] %vm21_vm0, %v288_v19  ;;  %v287_v31 = vadd.f32 %v264_v21, %v52_v15 }
  0xe6   :  { %v319_v29 = vld [vmem:[#allocation2 + $0x50] sm:$0xff]  ;;  %388 = vst.msk [vmem:[%s770_s4 + $0x8] sm:$0xff] %vm21_vm0, %v372_v22  ;;  %v371_v32 = vmax.f32 %v355_v24, 0.0  ;;  %v334_v34 = vmul.f32 %v653_v52, %v311_v28  ;;  %v358_v36 = vadd.f32 %v660_v60, %v335_v26  ;;  %296 = vst.msk [vmem:[#allocation2 + $0x30] sm:$0xff] %vm21_vm0, %v279_v30 }
  0xe7   :  { %396 = vst.msk [vmem:[%s770_s4 + $0x48] sm:$0xff] %vm21_vm0, %v380_v23  ;;  %v379_v33 = vmax.f32 %v363_v25, 0.0  ;;  %v342_v35 = vmul.f32 %v653_v52, %v319_v29  ;;  %v366_v37 = vadd.f32 %v660_v60, %v343_v27  ;;  %v314_v38 = vld [vmem:[#allocation2 + $0x28] sm:$0xff]  ;;  %304 = vst.msk [vmem:[#allocation2 + $0x70] sm:$0xff] %vm21_vm0, %v287_v31 }
  0xe8   :  { %v322_v39 = vld [vmem:[#allocation2 + $0x68] sm:$0xff]  ;;  %387 = vst.msk [vmem:[%s770_s4] sm:$0xff] %vm21_vm0, %v371_v32  ;;  %v357_v40 = vadd.f32 %v660_v60, %v334_v34  ;;  %v337_v42 = vmul.f32 %v653_v52, %v314_v38  ;;  %v374_v44 = vmax.f32 %v358_v36, 0.0 }
  0xe9   :  { %395 = vst.msk [vmem:[%s770_s4 + $0x40] sm:$0xff] %vm21_vm0, %v379_v33  ;;  %v365_v41 = vadd.f32 %v660_v60, %v342_v35  ;;  %v345_v43 = vmul.f32 %v653_v52, %v322_v39  ;;  %v382_v45 = vmax.f32 %v366_v37, 0.0  ;;  %v313_v46 = vld [vmem:[#allocation2 + $0x20] sm:$0xff] }
  0xea   :  { %v321_v47 = vld [vmem:[#allocation2 + $0x60] sm:$0xff]  ;;  %v373_v48 = vmax.f32 %v357_v40, 0.0  ;;  %v360_v50 = vadd.f32 %v660_v60, %v337_v42  ;;  %390 = vst.msk [vmem:[%s770_s4 + $0x18] sm:$0xff] %vm21_vm0, %v374_v44  ;;  %v336_v53 = vmul.f32 %v653_v52, %v313_v46 }
  0xeb   :  { %v381_v49 = vmax.f32 %v365_v41, 0.0  ;;  %v368_v51 = vadd.f32 %v660_v60, %v345_v43  ;;  %398 = vst.msk [vmem:[%s770_s4 + $0x58] sm:$0xff] %vm21_vm0, %v382_v45  ;;  %v344_v54 = vmul.f32 %v653_v52, %v321_v47  ;;  %v316_v57 = vld [vmem:[#allocation2 + $0x38] sm:$0xff] }
  0xec   :  { %389 = vst.msk [vmem:[%s770_s4 + $0x10] sm:$0xff] %vm21_vm0, %v373_v48  ;;  %v376_v55 = vmax.f32 %v360_v50, 0.0  ;;  %v324_v58 = vld [vmem:[#allocation2 + $0x78] sm:$0xff]  ;;  %v359_v59 = vadd.f32 %v660_v60, %v336_v53  ;;  %v339_v62 = vmul.f32 %v653_v52, %v316_v57 }
  0xed   :  { %397 = vst.msk [vmem:[%s770_s4 + $0x50] sm:$0xff] %vm21_vm0, %v381_v49  ;;  %v384_v56 = vmax.f32 %v368_v51, 0.0  ;;  %v367_v61 = vadd.f32 %v660_v60, %v344_v54  ;;  %v347_v63 = vmul.f32 %v653_v52, %v324_v58  ;;  %v315_v0 = vld [vmem:[#allocation2 + $0x30] sm:$0xff] }
  0xee   :  { %392 = vst.msk [vmem:[%s770_s4 + $0x28] sm:$0xff] %vm21_vm0, %v376_v55  ;;  %v323_v1 = vld [vmem:[#allocation2 + $0x70] sm:$0xff]  ;;  %v375_v2 = vmax.f32 %v359_v59, 0.0  ;;  %v362_v4 = vadd.f32 %v660_v60, %v339_v62  ;;  %v338_v6 = vmul.f32 %v653_v52, %v315_v0 }
  0xef   :  { %400 = vst.msk [vmem:[%s770_s4 + $0x68] sm:$0xff] %vm21_vm0, %v384_v56  ;;  %v383_v3 = vmax.f32 %v367_v61, 0.0  ;;  %v370_v5 = vadd.f32 %v660_v60, %v347_v63  ;;  %v346_v7 = vmul.f32 %v653_v52, %v323_v1 }
  0xf0   :  { %391 = vst.msk [vmem:[%s770_s4 + $0x20] sm:$0xff] %vm21_vm0, %v375_v2  ;;  %v378_v8 = vmax.f32 %v362_v4, 0.0  ;;  %v361_v10 = vadd.f32 %v660_v60, %v338_v6 }
  0xf1   :  { %399 = vst.msk [vmem:[%s770_s4 + $0x60] sm:$0xff] %vm21_vm0, %v383_v3  ;;  %v386_v9 = vmax.f32 %v370_v5, 0.0  ;;  %v369_v11 = vadd.f32 %v660_v60, %v346_v7 }
  0xf2   :  { %394 = vst.msk [vmem:[%s770_s4 + $0x38] sm:$0xff] %vm21_vm0, %v378_v8  ;;  %v377_v52 = vmax.f32 %v361_v10, 0.0 }
  0xf3   :  { %402 = vst.msk [vmem:[%s770_s4 + $0x78] sm:$0xff] %vm21_vm0, %v386_v9  ;;  %v385_v12 = vmax.f32 %v369_v11, 0.0 }
  0xf4   :  { %393 = vst.msk [vmem:[%s770_s4 + $0x30] sm:$0xff] %vm21_vm0, %v377_v52 }
  0xf5   :  { %401 = vst.msk [vmem:[%s770_s4 + $0x70] sm:$0xff] %vm21_vm0, %v385_v12 }

// kernel: res_layer_forward.4
= control target key start
LH: loop header
LB: loop body
LE: loop exit
PB: predicated region body
PF: predicated region fallthrough
CT: control target
= control target key end

     0   :  { %vm21_vm0 = vcmask 64512   ;;  %v469_v2 = vmov 0.0   ;;  %vm72_vm1 = vcmask 130048   ;;  %s703_s1 = inlined_call_operand.vmem [shape: f32[16,8], index: 1, kind: input, shape index: {}]   ;;  %s704_s0 = inlined_call_operand.vmem [shape: f32[128,16], index: 0, kind: input, shape index: {}]   ;;  %s705_s2 = inlined_call_operand.vmem [shape: f32[1,8], index: 2, kind: input, shape index: {}]   ;;  %s706_s3 = inlined_call_operand.vmem [shape: f32[1,8], index: 3, kind: input, shape index: {}]   ;;  %s707_s4 = inlined_call_operand.vmem [shape: f32[128,8], index: 4, kind: output, shape index: {}]  }
   0x1   :  { %v71_v0 = vld [vmem:[%s703_s1 + $0x8] sm:$0xff]  ;;  %v70_v1 = vld [vmem:[%s703_s1] sm:$0xff]  ;;  %23 = vst.msk [vmem:[#allocation2 + $0x8] sm:$0xff] %vm21_vm0, %v469_v2  ;;  %22 = vst.msk [vmem:[#allocation2] sm:$0xff] %vm21_vm0, %v469_v2 }
   0x2   :  { %24 = vst.msk [vmem:[#allocation2 + $0x10] sm:$0xff] %vm21_vm0, %v469_v2  ;;  %25 = vst.msk [vmem:[#allocation2 + $0x18] sm:$0xff] %vm21_vm0, %v469_v2  ;;  %436 = vmatprep.subr.mxu0 %v71_v0  ;;  %464 = vmatprep.subr.mxu1 %v71_v0  ;;  %v54_v3 = vld [vmem:[%s704_s0] sm:$0xff]  ;;  %v55_v5 = vld [vmem:[%s704_s0 + $0x8] sm:$0xff] }
   0x3   :  { %26 = vst.msk [vmem:[#allocation2 + $0x20] sm:$0xff] %vm21_vm0, %v469_v2  ;;  %27 = vst.msk [vmem:[#allocation2 + $0x28] sm:$0xff] %vm21_vm0, %v469_v2  ;;  %437 = vmatpush3.msra.mxu0 %v71_v0  ;;  %466 = vmatpush3.msra.mxu1 %v71_v0  ;;  %v62_v4 = vld [vmem:[%s704_s0 + $0x40] sm:$0xff]  ;;  %v63_v6 = vld [vmem:[%s704_s0 + $0x48] sm:$0xff] }
   0x4   :  { %28 = vst.msk [vmem:[#allocation2 + $0x30] sm:$0xff] %vm21_vm0, %v469_v2  ;;  %29 = vst.msk [vmem:[#allocation2 + $0x38] sm:$0xff] %vm21_vm0, %v469_v2  ;;  %438 = vmatprep.subr.mxu0 %v70_v1  ;;  %465 = vmatprep.subr.mxu1 %v70_v1  ;;  %v56_v7 = vld [vmem:[%s704_s0 + $0x10] sm:$0xff]  ;;  %v57_v9 = vld [vmem:[%s704_s0 + $0x18] sm:$0xff] }
   0x5   :  { %30 = vst.msk [vmem:[#allocation2 + $0x40] sm:$0xff] %vm21_vm0, %v469_v2  ;;  %31 = vst.msk [vmem:[#allocation2 + $0x48] sm:$0xff] %vm21_vm0, %v469_v2  ;;  %439 = vmatpush3.msra.mxu0 %v70_v1  ;;  %467 = vmatpush3.msra.mxu1 %v70_v1  ;;  %v64_v8 = vld [vmem:[%s704_s0 + $0x50] sm:$0xff]  ;;  %v65_v10 = vld [vmem:[%s704_s0 + $0x58] sm:$0xff] }
   0x6   :  { %32 = vst.msk [vmem:[#allocation2 + $0x50] sm:$0xff] %vm21_vm0, %v469_v2  ;;  %33 = vst.msk [vmem:[#allocation2 + $0x58] sm:$0xff] %vm21_vm0, %v469_v2  ;;  %440 = vmatprep.mubr.msk.f32.mxu0 %vm72_vm1, %v54_v3  ;;  %452 = vmatprep.mubr.msk.f32.mxu1 %vm72_vm1, %v62_v4  ;;  %v58_v11 = vld [vmem:[%s704_s0 + $0x20] sm:$0xff]  ;;  %v59_v13 = vld [vmem:[%s704_s0 + $0x28] sm:$0xff] }
   0x7   :  { %34 = vst.msk [vmem:[#allocation2 + $0x60] sm:$0xff] %vm21_vm0, %v469_v2  ;;  %35 = vst.msk [vmem:[#allocation2 + $0x68] sm:$0xff] %vm21_vm0, %v469_v2  ;;  %441 = vmatmul.mubr.msk.f32.vlgmr.msra.gmra.mxu0 %vm72_vm1, %v55_v5  ;;  %453 = vmatmul.mubr.msk.f32.vlgmr.msra.gmra.mxu1 %vm72_vm1, %v63_v6  ;;  %v66_v12 = vld [vmem:[%s704_s0 + $0x60] sm:$0xff]  ;;  %v67_v14 = vld [vmem:[%s704_s0 + $0x68] sm:$0xff] }
   0x8   :  { %36 = vst.msk [vmem:[#allocation2 + $0x70] sm:$0xff] %vm21_vm0, %v469_v2  ;;  %37 = vst.msk [vmem:[#allocation2 + $0x78] sm:$0xff] %vm21_vm0, %v469_v2  ;;  %443 = vmatprep.mubr.msk.f32.mxu0 %vm72_vm1, %v56_v7  ;;  %455 = vmatprep.mubr.msk.f32.mxu1 %vm72_vm1, %v64_v8  ;;  %v60_v15 = vld [vmem:[%s704_s0 + $0x30] sm:$0xff]  ;;  %v61_v17 = vld [vmem:[%s704_s0 + $0x38] sm:$0xff] }
   0x9   :  { %v68_v16 = vld [vmem:[%s704_s0 + $0x70] sm:$0xff]  ;;  %v69_v18 = vld [vmem:[%s704_s0 + $0x78] sm:$0xff]  ;;  %v39_v19 = vld [vmem:[#allocation2 + $0x8] sm:$0xff] }
   0xa   :  { %v38_v23 = vld [vmem:[#allocation2] sm:$0xff]  ;;  %v41_v29 = vld [vmem:[#allocation2 + $0x18] sm:$0xff]  ;;  %v40_v35 = vld [vmem:[#allocation2 + $0x10] sm:$0xff] }
   0xb   :  { %444 = vmatmul.mubr.msk.f32.gmra.mxu0 %vm72_vm1, %v57_v9  ;;  %456 = vmatmul.mubr.msk.f32.gmra.mxu1 %vm72_vm1, %v65_v10  ;;  %v43_v41 = vld [vmem:[#allocation2 + $0x28] sm:$0xff]  ;;  %v590_v45 = vld [vmem:[%s705_s2] ss:$0 sm:$0xff]  ;;  %v45_v61 = vld [vmem:[#allocation2 + $0x38] sm:$0xff] }
   0xc   :  { %446 = vmatprep.mubr.msk.f32.mxu0 %vm72_vm1, %v58_v11  ;;  %458 = vmatprep.mubr.msk.f32.mxu1 %vm72_vm1, %v66_v12  ;;  %v47_v20 = vld [vmem:[#allocation2 + $0x48] sm:$0xff]  ;;  %v46_v24 = vld [vmem:[#allocation2 + $0x40] sm:$0xff]  ;;  %v44_v7 = vld [vmem:[#allocation2 + $0x30] sm:$0xff] }
   0xd   :  { %v49_v30 = vld [vmem:[#allocation2 + $0x58] sm:$0xff]  ;;  %v48_v36 = vld [vmem:[#allocation2 + $0x50] sm:$0xff]  ;;  %v42_v48 = vld [vmem:[#allocation2 + $0x20] sm:$0xff] }
   0xe   :  { %v51_v42 = vld [vmem:[#allocation2 + $0x68] sm:$0xff]  ;;  %v50_v49 = vld [vmem:[#allocation2 + $0x60] sm:$0xff] }
   0xf   :  { %447 = vmatmul.mubr.msk.f32.gmra.mxu0 %vm72_vm1, %v59_v13  ;;  %459 = vmatmul.mubr.msk.f32.gmra.mxu1 %vm72_vm1, %v67_v14  ;;  %v597_v53 = vld [vmem:[%s706_s3] ss:$0 sm:$0xff]  ;;  %v53_v62 = vld [vmem:[#allocation2 + $0x78] sm:$0xff]  ;;  %v52_v8 = vld [vmem:[#allocation2 + $0x70] sm:$0xff] }
  0x10   :  { %449 = vmatprep.mubr.msk.f32.mxu0 %vm72_vm1, %v60_v15  ;;  %461 = vmatprep.mubr.msk.f32.mxu1 %vm72_vm1, %v68_v16 }
  0x13   :  { %450 = vmatmul.mubr.msk.f32.gmra.mxu0 %vm72_vm1, %v61_v17  ;;  %462 = vmatmul.mubr.msk.f32.gmra.mxu1 %vm72_vm1, %v69_v18 }
  0xc7   :  { %v442_v21 = vpop.f32.mrf.mxu0  ;;  %v454_v22 = vpop.f32.mrf.mxu1 }
  0xc8   :  { %v267_v25 = vadd.f32 %v442_v21, %v39_v19  ;;  %v275_v26 = vadd.f32 %v454_v22, %v47_v20 }
  0xc9   :  { %v187_v27 = vpop.f32.mrf.mxu0  ;;  %v227_v28 = vpop.f32.mrf.mxu1 }
  0xca   :  { %284 = vst.msk [vmem:[#allocation2 + $0x8] sm:$0xff] %vm21_vm0, %v267_v25  ;;  %292 = vst.msk [vmem:[#allocation2 + $0x48] sm:$0xff] %vm21_vm0, %v275_v26  ;;  %v266_v31 = vadd.f32 %v187_v27, %v38_v23  ;;  %v274_v32 = vadd.f32 %v227_v28, %v46_v24 }
  0xcb   :  { %v445_v33 = vpop.f32.mrf.mxu0  ;;  %v457_v34 = vpop.f32.mrf.mxu1 }
  0xcc   :  { %283 = vst.msk [vmem:[#allocation2] sm:$0xff] %vm21_vm0, %v266_v31  ;;  %291 = vst.msk [vmem:[#allocation2 + $0x40] sm:$0xff] %vm21_vm0, %v274_v32  ;;  %v269_v37 = vadd.f32 %v445_v33, %v41_v29  ;;  %v277_v38 = vadd.f32 %v457_v34, %v49_v30 }
  0xcd   :  { %v197_v39 = vpop.f32.mrf.mxu0  ;;  %v237_v40 = vpop.f32.mrf.mxu1 }
  0xce   :  { %286 = vst.msk [vmem:[#allocation2 + $0x18] sm:$0xff] %vm21_vm0, %v269_v37  ;;  %294 = vst.msk [vmem:[#allocation2 + $0x58] sm:$0xff] %vm21_vm0, %v277_v38  ;;  %v268_v43 = vadd.f32 %v197_v39, %v40_v35  ;;  %v276_v44 = vadd.f32 %v237_v40, %v48_v36 }
  0xcf   :  { %v448_v46 = vpop.f32.mrf.mxu0  ;;  %v460_v47 = vpop.f32.mrf.mxu1 }
  0xd0   :  { %285 = vst.msk [vmem:[#allocation2 + $0x10] sm:$0xff] %vm21_vm0, %v268_v43  ;;  %293 = vst.msk [vmem:[#allocation2 + $0x50] sm:$0xff] %vm21_vm0, %v276_v44  ;;  %v271_v50 = vadd.f32 %v448_v46, %v43_v41  ;;  %v279_v51 = vadd.f32 %v460_v47, %v51_v42 }
  0xd1   :  { %v303_v52 = vld [vmem:[#allocation2 + $0x8] sm:$0xff]  ;;  %v207_v55 = vpop.f32.mrf.mxu0  ;;  %v247_v56 = vpop.f32.mrf.mxu1 }
  0xd2   :  { %v311_v54 = vld [vmem:[#allocation2 + $0x48] sm:$0xff]  ;;  %v326_v57 = vmul.f32 %v590_v45, %v303_v52  ;;  %288 = vst.msk [vmem:[#allocation2 + $0x28] sm:$0xff] %vm21_vm0, %v271_v50  ;;  %296 = vst.msk [vmem:[#allocation2 + $0x68] sm:$0xff] %vm21_vm0, %v279_v51  ;;  %v270_v59 = vadd.f32 %v207_v55, %v42_v48  ;;  %v278_v60 = vadd.f32 %v247_v56, %v50_v49 }
  0xd3   :  { %v334_v58 = vmul.f32 %v590_v45, %v311_v54  ;;  %v302_v63 = vld [vmem:[#allocation2] sm:$0xff]  ;;  %v451_v1 = vpop.f32.mrf.mxu0  ;;  %v463_v2 = vpop.f32.mrf.mxu1 }
  0xd4   :  { %v310_v0 = vld [vmem:[#allocation2 + $0x40] sm:$0xff]  ;;  %v349_v3 = vadd.f32 %v597_v53, %v326_v57  ;;  %v325_v5 = vmul.f32 %v590_v45, %v302_v63  ;;  %287 = vst.msk [vmem:[#allocation2 + $0x20] sm:$0xff] %vm21_vm0, %v270_v59  ;;  %295 = vst.msk [vmem:[#allocation2 + $0x60] sm:$0xff] %vm21_vm0, %v278_v60  ;;  %v273_v11 = vadd.f32 %v451_v1, %v45_v61 }
  0xd5   :  { %v357_v4 = vadd.f32 %v597_v53, %v334_v58  ;;  %v333_v6 = vmul.f32 %v590_v45, %v310_v0  ;;  %v305_v9 = vld [vmem:[#allocation2 + $0x18] sm:$0xff]  ;;  %v281_v12 = vadd.f32 %v463_v2, %v53_v62  ;;  %v217_v13 = vpop.f32.mrf.mxu0  ;;  %v257_v14 = vpop.f32.mrf.mxu1 }
  0xd6   :  { %v313_v10 = vld [vmem:[#allocation2 + $0x58] sm:$0xff]  ;;  %v365_v15 = vmax.f32 %v349_v3, 0.0  ;;  %v348_v17 = vadd.f32 %v597_v53, %v325_v5  ;;  %v328_v19 = vmul.f32 %v590_v45, %v305_v9  ;;  %290 = vst.msk [vmem:[#allocation2 + $0x38] sm:$0xff] %vm21_vm0, %v273_v11  ;;  %v272_v23 = vadd.f32 %v217_v13, %v44_v7 }
  0xd7   :  { %v373_v16 = vmax.f32 %v357_v4, 0.0  ;;  %v356_v18 = vadd.f32 %v597_v53, %v333_v6  ;;  %v336_v20 = vmul.f32 %v590_v45, %v313_v10  ;;  %v304_v21 = vld [vmem:[#allocation2 + $0x10] sm:$0xff]  ;;  %298 = vst.msk [vmem:[#allocation2 + $0x78] sm:$0xff] %vm21_vm0, %v281_v12  ;;  %v280_v24 = vadd.f32 %v257_v14, %v52_v8 }
  0xd8   :  { %v312_v22 = vld [vmem:[#allocation2 + $0x50] sm:$0xff]  ;;  %381 = vst.msk [vmem:[%s707_s4 + $0x8] sm:$0xff] %vm21_vm0, %v365_v15  ;;  %v364_v25 = vmax.f32 %v348_v17, 0.0  ;;  %v327_v27 = vmul.f32 %v590_v45, %v304_v21  ;;  %v351_v29 = vadd.f32 %v597_v53, %v328_v19  ;;  %289 = vst.msk [vmem:[#allocation2 + $0x30] sm:$0xff] %vm21_vm0, %v272_v23 }
  0xd9   :  { %389 = vst.msk [vmem:[%s707_s4 + $0x48] sm:$0xff] %vm21_vm0, %v373_v16  ;;  %v372_v26 = vmax.f32 %v356_v18, 0.0  ;;  %v335_v28 = vmul.f32 %v590_v45, %v312_v22  ;;  %v359_v30 = vadd.f32 %v597_v53, %v336_v20  ;;  %v307_v31 = vld [vmem:[#allocation2 + $0x28] sm:$0xff]  ;;  %297 = vst.msk [vmem:[#allocation2 + $0x70] sm:$0xff] %vm21_vm0, %v280_v24 }
  0xda   :  { %v315_v32 = vld [vmem:[#allocation2 + $0x68] sm:$0xff]  ;;  %380 = vst.msk [vmem:[%s707_s4] sm:$0xff] %vm21_vm0, %v364_v25  ;;  %v350_v33 = vadd.f32 %v597_v53, %v327_v27  ;;  %v330_v35 = vmul.f32 %v590_v45, %v307_v31  ;;  %v367_v37 = vmax.f32 %v351_v29, 0.0 }
  0xdb   :  { %388 = vst.msk [vmem:[%s707_s4 + $0x40] sm:$0xff] %vm21_vm0, %v372_v26  ;;  %v358_v34 = vadd.f32 %v597_v53, %v335_v28  ;;  %v338_v36 = vmul.f32 %v590_v45, %v315_v32  ;;  %v375_v38 = vmax.f32 %v359_v30, 0.0  ;;  %v306_v39 = vld [vmem:[#allocation2 + $0x20] sm:$0xff] }
  0xdc   :  { %v314_v40 = vld [vmem:[#allocation2 + $0x60] sm:$0xff]  ;;  %v366_v41 = vmax.f32 %v350_v33, 0.0  ;;  %v353_v43 = vadd.f32 %v597_v53, %v330_v35  ;;  %383 = vst.msk [vmem:[%s707_s4 + $0x18] sm:$0xff] %vm21_vm0, %v367_v37  ;;  %v329_v46 = vmul.f32 %v590_v45, %v306_v39 }
  0xdd   :  { %v374_v42 = vmax.f32 %v358_v34, 0.0  ;;  %v361_v44 = vadd.f32 %v597_v53, %v338_v36  ;;  %391 = vst.msk [vmem:[%s707_s4 + $0x58] sm:$0xff] %vm21_vm0, %v375_v38  ;;  %v337_v47 = vmul.f32 %v590_v45, %v314_v40  ;;  %v309_v50 = vld [vmem:[#allocation2 + $0x38] sm:$0xff] }
  0xde   :  { %382 = vst.msk [vmem:[%s707_s4 + $0x10] sm:$0xff] %vm21_vm0, %v366_v41  ;;  %v369_v48 = vmax.f32 %v353_v43, 0.0  ;;  %v317_v51 = vld [vmem:[#allocation2 + $0x78] sm:$0xff]  ;;  %v352_v52 = vadd.f32 %v597_v53, %v329_v46  ;;  %v332_v55 = vmul.f32 %v590_v45, %v309_v50 }
  0xdf   :  { %390 = vst.msk [vmem:[%s707_s4 + $0x50] sm:$0xff] %vm21_vm0, %v374_v42  ;;  %v377_v49 = vmax.f32 %v361_v44, 0.0  ;;  %v360_v54 = vadd.f32 %v597_v53, %v337_v47  ;;  %v340_v56 = vmul.f32 %v590_v45, %v317_v51  ;;  %v308_v57 = vld [vmem:[#allocation2 + $0x30] sm:$0xff] }
  0xe0   :  { %385 = vst.msk [vmem:[%s707_s4 + $0x28] sm:$0xff] %vm21_vm0, %v369_v48  ;;  %v316_v58 = vld [vmem:[#allocation2 + $0x70] sm:$0xff]  ;;  %v368_v59 = vmax.f32 %v352_v52, 0.0  ;;  %v355_v61 = vadd.f32 %v597_v53, %v332_v55  ;;  %v331_v63 = vmul.f32 %v590_v45, %v308_v57 }
  0xe1   :  { %393 = vst.msk [vmem:[%s707_s4 + $0x68] sm:$0xff] %vm21_vm0, %v377_v49  ;;  %v376_v60 = vmax.f32 %v360_v54, 0.0  ;;  %v363_v62 = vadd.f32 %v597_v53, %v340_v56  ;;  %v339_v0 = vmul.f32 %v590_v45, %v316_v58 }
  0xe2   :  { %384 = vst.msk [vmem:[%s707_s4 + $0x20] sm:$0xff] %vm21_vm0, %v368_v59  ;;  %v371_v1 = vmax.f32 %v355_v61, 0.0  ;;  %v354_v3 = vadd.f32 %v597_v53, %v331_v63 }
  0xe3   :  { %392 = vst.msk [vmem:[%s707_s4 + $0x60] sm:$0xff] %vm21_vm0, %v376_v60  ;;  %v379_v2 = vmax.f32 %v363_v62, 0.0  ;;  %v362_v4 = vadd.f32 %v597_v53, %v339_v0 }
  0xe4   :  { %387 = vst.msk [vmem:[%s707_s4 + $0x38] sm:$0xff] %vm21_vm0, %v371_v1  ;;  %v370_v45 = vmax.f32 %v354_v3, 0.0 }
  0xe5   :  { %395 = vst.msk [vmem:[%s707_s4 + $0x78] sm:$0xff] %vm21_vm0, %v379_v2  ;;  %v378_v5 = vmax.f32 %v362_v4, 0.0 }
  0xe6   :  { %386 = vst.msk [vmem:[%s707_s4 + $0x30] sm:$0xff] %vm21_vm0, %v370_v45 }
  0xe7   :  { %394 = vst.msk [vmem:[%s707_s4 + $0x70] sm:$0xff] %vm21_vm0, %v378_v5 }

// kernel: res_layer_forward.7
= control target key start
LH: loop header
LB: loop body
LE: loop exit
PB: predicated region body
PF: predicated region fallthrough
CT: control target
= control target key end

     0   :  { %vm75_vm0 = vcmask 64512   ;;  %vm25_vm1 = vcmask 261120   ;;  %v536_v5 = vmov 0.0   ;;  %s778_s0 = inlined_call_operand.vmem [shape: f32[128,8], index: 0, kind: input, shape index: {}]   ;;  %s779_s1 = inlined_call_operand.vmem [shape: f32[8,32], index: 1, kind: input, shape index: {}]   ;;  %s780_s2 = inlined_call_operand.vmem [shape: f32[1,32], index: 2, kind: input, shape index: {}]   ;;  %s781_s3 = inlined_call_operand.vmem [shape: f32[1,32], index: 3, kind: input, shape index: {}]   ;;  %s782_s4 = inlined_call_operand.vmem [shape: f32[128,32], index: 4, kind: input, shape index: {}]   ;;  %s783_s5 = inlined_call_operand.hbm [shape: f32[128,32], index: 5, kind: output, shape index: {}]  }
   0x1   :  { %v74_v0 = vld [vmem:[%s779_s1] sm:$0xff]  ;;  %v59_v3 = vld [vmem:[%s778_s0 + $0x8] sm:$0xff]  ;;  %27 = vst.msk [vmem:[#allocation2 + $0x8] sm:$0xff] %vm25_vm1, %v536_v5  ;;  %26 = vst.msk [vmem:[#allocation2] sm:$0xff] %vm25_vm1, %v536_v5 }
   0x2   :  { %v58_v1 = vld [vmem:[%s778_s0] sm:$0xff]  ;;  %482 = vmatprep.subr.mxu0 %v74_v0  ;;  %508 = vmatprep.subr.mxu1 %v74_v0  ;;  %v67_v4 = vld [vmem:[%s778_s0 + $0x48] sm:$0xff]  ;;  %28 = vst.msk [vmem:[#allocation2 + $0x10] sm:$0xff] %vm25_vm1, %v536_v5  ;;  %29 = vst.msk [vmem:[#allocation2 + $0x18] sm:$0xff] %vm25_vm1, %v536_v5 }
   0x3   :  { %v66_v2 = vld [vmem:[%s778_s0 + $0x40] sm:$0xff]  ;;  %30 = vst.msk [vmem:[#allocation2 + $0x20] sm:$0xff] %vm25_vm1, %v536_v5  ;;  %31 = vst.msk [vmem:[#allocation2 + $0x28] sm:$0xff] %vm25_vm1, %v536_v5  ;;  %483 = vmatpush3.msra.mxu0 %v74_v0  ;;  %509 = vmatpush3.msra.mxu1 %v74_v0  ;;  %v60_v6 = vld [vmem:[%s778_s0 + $0x10] sm:$0xff] }
   0x4   :  { %32 = vst.msk [vmem:[#allocation2 + $0x30] sm:$0xff] %vm25_vm1, %v536_v5  ;;  %33 = vst.msk [vmem:[#allocation2 + $0x38] sm:$0xff] %vm25_vm1, %v536_v5  ;;  %v68_v7 = vld [vmem:[%s778_s0 + $0x50] sm:$0xff]  ;;  %484 = vmatprep.mubr.msk.f32.mxu0 %vm75_vm0, %v58_v1  ;;  %496 = vmatprep.mubr.msk.f32.mxu1 %vm75_vm0, %v66_v2  ;;  %v61_v8 = vld [vmem:[%s778_s0 + $0x18] sm:$0xff] }
   0x5   :  { %34 = vst.msk [vmem:[#allocation2 + $0x40] sm:$0xff] %vm25_vm1, %v536_v5  ;;  %35 = vst.msk [vmem:[#allocation2 + $0x48] sm:$0xff] %vm25_vm1, %v536_v5  ;;  %485 = vmatmul.mubr.msk.f32.vlgmr.msra.gmra.mxu0 %vm75_vm0, %v59_v3  ;;  %497 = vmatmul.mubr.msk.f32.vlgmr.msra.gmra.mxu1 %vm75_vm0, %v67_v4  ;;  %v69_v9 = vld [vmem:[%s778_s0 + $0x58] sm:$0xff] }
   0x6   :  { %36 = vst.msk [vmem:[#allocation2 + $0x50] sm:$0xff] %vm25_vm1, %v536_v5  ;;  %37 = vst.msk [vmem:[#allocation2 + $0x58] sm:$0xff] %vm25_vm1, %v536_v5  ;;  %487 = vmatprep.mubr.msk.f32.mxu0 %vm75_vm0, %v60_v6  ;;  %499 = vmatprep.mubr.msk.f32.mxu1 %vm75_vm0, %v68_v7 }
   0x7   :  { %38 = vst.msk [vmem:[#allocation2 + $0x60] sm:$0xff] %vm25_vm1, %v536_v5  ;;  %39 = vst.msk [vmem:[#allocation2 + $0x68] sm:$0xff] %vm25_vm1, %v536_v5 }
   0x8   :  { %40 = vst.msk [vmem:[#allocation2 + $0x70] sm:$0xff] %vm25_vm1, %v536_v5  ;;  %41 = vst.msk [vmem:[#allocation2 + $0x78] sm:$0xff] %vm25_vm1, %v536_v5 }
   0x9   :  { %10 = vsyncpa [#allocation4], 0  ;;  %v62_v10 = vld [vmem:[%s778_s0 + $0x20] sm:$0xff]  ;;  %488 = vmatmul.mubr.msk.f32.gmra.mxu0 %vm75_vm0, %v61_v8  ;;  %500 = vmatmul.mubr.msk.f32.gmra.mxu1 %vm75_vm0, %v69_v9  ;;  %v63_v12 = vld [vmem:[%s778_s0 + $0x28] sm:$0xff]  ;;  %s537_s29 = smov [#allocation3]  }
   0xa   :  { %v70_v11 = vld [vmem:[%s778_s0 + $0x60] sm:$0xff]  ;;  %490 = vmatprep.mubr.msk.f32.mxu0 %vm75_vm0, %v62_v10  ;;  %v71_v13 = vld [vmem:[%s778_s0 + $0x68] sm:$0xff]  ;;  %v64_v14 = vld [vmem:[%s778_s0 + $0x30] sm:$0xff]  ;;  %s436_s30 = sshll.u32 %s537_s29, 4  ;;  %s437_s30 = int_to_ptr.vmem [resolvable:$true] %s436_s30 }
   0xb   :  { %502 = vmatprep.mubr.msk.f32.mxu1 %vm75_vm0, %v70_v11  ;;  %v72_v15 = vld [vmem:[%s778_s0 + $0x70] sm:$0xff]  ;;  %v65_v16 = vld [vmem:[%s778_s0 + $0x38] sm:$0xff]  ;;  %v43_v18 = vld [vmem:[#allocation2 + $0x8] sm:$0xff]  ;;  %p519_p1 = scmp.lt.s32.totalorder %s437_s30, %s437_s30 }
   0xc   :  { %v73_v17 = vld [vmem:[%s778_s0 + $0x78] sm:$0xff]  ;;  %v51_v19 = vld [vmem:[#allocation2 + $0x48] sm:$0xff]  ;;  %v42_v22 = vld [vmem:[#allocation2] sm:$0xff] }
   0xd   :  { %491 = vmatmul.mubr.msk.f32.gmra.mxu0 %vm75_vm0, %v63_v12  ;;  %503 = vmatmul.mubr.msk.f32.gmra.mxu1 %vm75_vm0, %v71_v13  ;;  %v50_v23 = vld [vmem:[#allocation2 + $0x40] sm:$0xff]  ;;  %v45_v28 = vld [vmem:[#allocation2 + $0x18] sm:$0xff]  ;;  %v44_v34 = vld [vmem:[#allocation2 + $0x10] sm:$0xff] }
   0xe   :  { %493 = vmatprep.mubr.msk.f32.mxu0 %vm75_vm0, %v64_v14  ;;  %505 = vmatprep.mubr.msk.f32.mxu1 %vm75_vm0, %v72_v15  ;;  %v53_v29 = vld [vmem:[#allocation2 + $0x58] sm:$0xff]  ;;  %v52_v35 = vld [vmem:[#allocation2 + $0x50] sm:$0xff]  ;;  %v47_v40 = vld [vmem:[#allocation2 + $0x28] sm:$0xff] }
   0xf   :  { %v55_v41 = vld [vmem:[#allocation2 + $0x68] sm:$0xff]  ;;  %v662_v44 = vld [vmem:[%s780_s2] ss:$0 sm:$0xff]  ;;  %v49_v61 = vld [vmem:[#allocation2 + $0x38] sm:$0xff] }
  0x10   :  { %v46_v47 = vld [vmem:[#allocation2 + $0x20] sm:$0xff]  ;;  %v368_v57 = vld [vmem:[%s782_s4 + $0x8] sm:$0xff]  ;;  %v57_v62 = vld [vmem:[#allocation2 + $0x78] sm:$0xff] }
  0x11   :  { %494 = vmatmul.mubr.msk.f32.gmra.mxu0 %vm75_vm0, %v65_v16  ;;  %506 = vmatmul.mubr.msk.f32.gmra.mxu1 %vm75_vm0, %v73_v17  ;;  %v54_v48 = vld [vmem:[#allocation2 + $0x60] sm:$0xff]  ;;  %v376_v63 = vld [vmem:[%s782_s4 + $0x48] sm:$0xff]  ;;  %v48_v9 = vld [vmem:[#allocation2 + $0x30] sm:$0xff] }
  0x12   :  { %v669_v52 = vld [vmem:[%s781_s3] ss:$0 sm:$0xff]  ;;  %v56_v10 = vld [vmem:[#allocation2 + $0x70] sm:$0xff] }
  0x13   :  { %v367_v7 = vld [vmem:[%s782_s4] sm:$0xff] }
  0x14   :  { %v375_v11 = vld [vmem:[%s782_s4 + $0x40] sm:$0xff] }
  0xc5   :  { %v486_v20 = vpop.f32.mrf.mxu0  ;;  %v498_v21 = vpop.f32.mrf.mxu1 }
  0xc6   :  { %v270_v24 = vadd.f32 %v486_v20, %v43_v18  ;;  %v278_v25 = vadd.f32 %v498_v21, %v51_v19 }
  0xc7   :  { %v190_v26 = vpop.f32.mrf.mxu0  ;;  %v230_v27 = vpop.f32.mrf.mxu1 }
  0xc8   :  { %287 = vst.msk [vmem:[#allocation2 + $0x8] sm:$0xff] %vm25_vm1, %v270_v24  ;;  %295 = vst.msk [vmem:[#allocation2 + $0x48] sm:$0xff] %vm25_vm1, %v278_v25  ;;  %v269_v30 = vadd.f32 %v190_v26, %v42_v22  ;;  %v277_v31 = vadd.f32 %v230_v27, %v50_v23 }
  0xc9   :  { %v489_v32 = vpop.f32.mrf.mxu0  ;;  %v501_v33 = vpop.f32.mrf.mxu1 }
  0xca   :  { %286 = vst.msk [vmem:[#allocation2] sm:$0xff] %vm25_vm1, %v269_v30  ;;  %294 = vst.msk [vmem:[#allocation2 + $0x40] sm:$0xff] %vm25_vm1, %v277_v31  ;;  %v272_v36 = vadd.f32 %v489_v32, %v45_v28  ;;  %v280_v37 = vadd.f32 %v501_v33, %v53_v29  ;;  %v370_v32 = vld [vmem:[%s782_s4 + $0x18] sm:$0xff] }
  0xcb   :  { %v200_v38 = vpop.f32.mrf.mxu0  ;;  %v240_v39 = vpop.f32.mrf.mxu1  ;;  %v378_v33 = vld [vmem:[%s782_s4 + $0x58] sm:$0xff] }
  0xcc   :  { %289 = vst.msk [vmem:[#allocation2 + $0x18] sm:$0xff] %vm25_vm1, %v272_v36  ;;  %297 = vst.msk [vmem:[#allocation2 + $0x58] sm:$0xff] %vm25_vm1, %v280_v37  ;;  %v271_v42 = vadd.f32 %v200_v38, %v44_v34  ;;  %v279_v43 = vadd.f32 %v240_v39, %v52_v35 }
  0xcd   :  { %v492_v45 = vpop.f32.mrf.mxu0  ;;  %v504_v46 = vpop.f32.mrf.mxu1 }
  0xce   :  { %288 = vst.msk [vmem:[#allocation2 + $0x10] sm:$0xff] %vm25_vm1, %v271_v42  ;;  %296 = vst.msk [vmem:[#allocation2 + $0x50] sm:$0xff] %vm25_vm1, %v279_v43  ;;  %v274_v49 = vadd.f32 %v492_v45, %v47_v40  ;;  %v282_v50 = vadd.f32 %v504_v46, %v55_v41  ;;  %v369_v42 = vld [vmem:[%s782_s4 + $0x10] sm:$0xff]  ;;  %v372_v46 = vld [vmem:[%s782_s4 + $0x28] sm:$0xff] }
  0xcf   :  { %v306_v51 = vld [vmem:[#allocation2 + $0x8] sm:$0xff]  ;;  %v210_v54 = vpop.f32.mrf.mxu0  ;;  %v250_v55 = vpop.f32.mrf.mxu1  ;;  %v377_v43 = vld [vmem:[%s782_s4 + $0x50] sm:$0xff] }
  0xd0   :  { %v314_v53 = vld [vmem:[#allocation2 + $0x48] sm:$0xff]  ;;  %v329_v56 = vmul.f32 %v662_v44, %v306_v51  ;;  %291 = vst.msk [vmem:[#allocation2 + $0x28] sm:$0xff] %vm25_vm1, %v274_v49  ;;  %299 = vst.msk [vmem:[#allocation2 + $0x68] sm:$0xff] %vm25_vm1, %v282_v50  ;;  %v273_v59 = vadd.f32 %v210_v54, %v46_v47  ;;  %v281_v60 = vadd.f32 %v250_v55, %v54_v48 }
  0xd1   :  { %v337_v58 = vmul.f32 %v662_v44, %v314_v53  ;;  %v305_v0 = vld [vmem:[#allocation2] sm:$0xff]  ;;  %v495_v2 = vpop.f32.mrf.mxu0  ;;  %v507_v3 = vpop.f32.mrf.mxu1  ;;  %v380_v53 = vld [vmem:[%s782_s4 + $0x68] sm:$0xff] }
  0xd2   :  { %v313_v1 = vld [vmem:[#allocation2 + $0x40] sm:$0xff]  ;;  %v352_v4 = vadd.f32 %v669_v52, %v329_v56  ;;  %v328_v6 = vmul.f32 %v662_v44, %v305_v0  ;;  %290 = vst.msk [vmem:[#allocation2 + $0x20] sm:$0xff] %vm25_vm1, %v273_v59  ;;  %298 = vst.msk [vmem:[#allocation2 + $0x60] sm:$0xff] %vm25_vm1, %v281_v60  ;;  %v276_v14 = vadd.f32 %v495_v2, %v49_v61 }
  0xd3   :  { %v360_v5 = vadd.f32 %v669_v52, %v337_v58  ;;  %v336_v8 = vmul.f32 %v662_v44, %v313_v1  ;;  %v308_v12 = vld [vmem:[#allocation2 + $0x18] sm:$0xff]  ;;  %v284_v15 = vadd.f32 %v507_v3, %v57_v62  ;;  %v220_v16 = vpop.f32.mrf.mxu0  ;;  %v260_v17 = vpop.f32.mrf.mxu1  ;;  %v371_v0 = vld [vmem:[%s782_s4 + $0x20] sm:$0xff] }
  0xd4   :  { %v316_v13 = vld [vmem:[#allocation2 + $0x58] sm:$0xff]  ;;  %v384_v18 = vadd.f32 %v368_v57, %v352_v4  ;;  %v351_v20 = vadd.f32 %v669_v52, %v328_v6  ;;  %v331_v22 = vmul.f32 %v662_v44, %v308_v12  ;;  %293 = vst.msk [vmem:[#allocation2 + $0x38] sm:$0xff] %vm25_vm1, %v276_v14  ;;  %v275_v26 = vadd.f32 %v220_v16, %v48_v9  ;;  %v379_v1 = vld [vmem:[%s782_s4 + $0x60] sm:$0xff] }
  0xd5   :  { %v392_v19 = vadd.f32 %v376_v63, %v360_v5  ;;  %v359_v21 = vadd.f32 %v669_v52, %v336_v8  ;;  %v339_v23 = vmul.f32 %v662_v44, %v316_v13  ;;  %v307_v24 = vld [vmem:[#allocation2 + $0x10] sm:$0xff]  ;;  %301 = vst.msk [vmem:[#allocation2 + $0x78] sm:$0xff] %vm25_vm1, %v284_v15  ;;  %v283_v27 = vadd.f32 %v260_v17, %v56_v10  ;;  %v382_v17 = vld [vmem:[%s782_s4 + $0x78] sm:$0xff] }
  0xd6   :  { %v315_v25 = vld [vmem:[#allocation2 + $0x50] sm:$0xff]  ;;  %v400_v28 = vmax.f32 %v384_v18, 0.0  ;;  %v383_v30 = vadd.f32 %v367_v7, %v351_v20  ;;  %v354_v34 = vadd.f32 %v669_v52, %v331_v22  ;;  %v330_v36 = vmul.f32 %v662_v44, %v307_v24  ;;  %292 = vst.msk [vmem:[#allocation2 + $0x30] sm:$0xff] %vm25_vm1, %v275_v26 }
  0xd7   :  { %v408_v29 = vmax.f32 %v392_v19, 0.0  ;;  %v391_v31 = vadd.f32 %v375_v11, %v359_v21  ;;  %v362_v35 = vadd.f32 %v669_v52, %v339_v23  ;;  %v338_v37 = vmul.f32 %v662_v44, %v315_v25  ;;  %v310_v38 = vld [vmem:[#allocation2 + $0x28] sm:$0xff]  ;;  %300 = vst.msk [vmem:[#allocation2 + $0x70] sm:$0xff] %vm25_vm1, %v283_v27  ;;  %v374_v11 = vld [vmem:[%s782_s4 + $0x38] sm:$0xff]  ;;  %v373_v26 = vld [vmem:[%s782_s4 + $0x30] sm:$0xff] }
  0xd8   :  { %v318_v39 = vld [vmem:[#allocation2 + $0x68] sm:$0xff]  ;;  %416 = vst.msk [vmem:[#allocation3 + $0x8] sm:$0xff] %vm25_vm1, %v400_v28  ;;  %v399_v40 = vmax.f32 %v383_v30, 0.0  ;;  %v333_v45 = vmul.f32 %v662_v44, %v310_v38  ;;  %v386_v48 = vadd.f32 %v370_v32, %v354_v34  ;;  %v353_v50 = vadd.f32 %v669_v52, %v330_v36  ;;  %v381_v27 = vld [vmem:[%s782_s4 + $0x70] sm:$0xff]  ;;  %s514_s4 = scalar_lea.vmem %s437_s30, 2048 }
  0xd9   :  { %424 = vst.msk [vmem:[#allocation3 + $0x48] sm:$0xff] %vm25_vm1, %v408_v29  ;;  %v407_v41 = vmax.f32 %v391_v31, 0.0  ;;  %v341_v47 = vmul.f32 %v662_v44, %v318_v39  ;;  %v394_v49 = vadd.f32 %v378_v33, %v362_v35  ;;  %v361_v51 = vadd.f32 %v669_v52, %v338_v37  ;;  %v309_v54 = vld [vmem:[#allocation2 + $0x20] sm:$0xff]  ;;  %p515_p0 = scmp.ne.s32.totalorder %s437_s30, %s514_s4  ;;  %p520_p2 = scmp.lt.s32.totalorder %s514_s4, %s514_s4 }
  0xda   :  { %v317_v55 = vld [vmem:[#allocation2 + $0x60] sm:$0xff]  ;;  %415 = vst.msk [vmem:[#allocation3] sm:$0xff] %vm25_vm1, %v399_v40  ;;  %v356_v56 = vadd.f32 %v669_v52, %v333_v45  ;;  %v332_v58 = vmul.f32 %v662_v44, %v309_v54  ;;  %v402_v60 = vmax.f32 %v386_v48, 0.0  ;;  %v385_v62 = vadd.f32 %v369_v42, %v353_v50 }
  0xdb   :  { %423 = vst.msk [vmem:[#allocation3 + $0x40] sm:$0xff] %vm25_vm1, %v407_v41  ;;  %v364_v57 = vadd.f32 %v669_v52, %v341_v47  ;;  %v340_v59 = vmul.f32 %v662_v44, %v317_v55  ;;  %v410_v61 = vmax.f32 %v394_v49, 0.0  ;;  %v393_v63 = vadd.f32 %v377_v43, %v361_v51  ;;  %v312_v6 = vld [vmem:[#allocation2 + $0x38] sm:$0xff]  ;;  %p521_p3 = por %p520_p2, %p519_p1 }
  0xdc   :  { %v388_v2 = vadd.f32 %v372_v46, %v356_v56  ;;  %v355_v4 = vadd.f32 %v669_v52, %v332_v58  ;;  %v320_v7 = vld [vmem:[#allocation2 + $0x78] sm:$0xff]  ;;  %418 = vst.msk [vmem:[#allocation3 + $0x18] sm:$0xff] %vm25_vm1, %v402_v60  ;;  %v401_v8 = vmax.f32 %v385_v62, 0.0  ;;  %v335_v10 = vmul.f32 %v662_v44, %v312_v6 }
  0xdd   :  { %v396_v3 = vadd.f32 %v380_v53, %v364_v57  ;;  %v363_v5 = vadd.f32 %v669_v52, %v340_v59  ;;  %426 = vst.msk [vmem:[#allocation3 + $0x58] sm:$0xff] %vm25_vm1, %v410_v61  ;;  %v409_v9 = vmax.f32 %v393_v63, 0.0  ;;  %v343_v12 = vmul.f32 %v662_v44, %v320_v7  ;;  %v311_v18 = vld [vmem:[#allocation2 + $0x30] sm:$0xff]  ;;  %p522_p4 = pnand %p521_p3, %p515_p0 }
  0xde   :  { %v404_v13 = vmax.f32 %v388_v2, 0.0  ;;  %v387_v15 = vadd.f32 %v371_v0, %v355_v4  ;;  %v319_v19 = vld [vmem:[#allocation2 + $0x70] sm:$0xff]  ;;  %417 = vst.msk [vmem:[#allocation3 + $0x10] sm:$0xff] %vm25_vm1, %v401_v8  ;;  %v358_v20 = vadd.f32 %v669_v52, %v335_v10  ;;  %v334_v22 = vmul.f32 %v662_v44, %v311_v18 }
  0xdf   :  { %v412_v14 = vmax.f32 %v396_v3, 0.0  ;;  %v395_v16 = vadd.f32 %v379_v1, %v363_v5  ;;  %425 = vst.msk [vmem:[#allocation3 + $0x50] sm:$0xff] %vm25_vm1, %v409_v9  ;;  %v366_v21 = vadd.f32 %v669_v52, %v343_v12  ;;  %v342_v23 = vmul.f32 %v662_v44, %v319_v19 }
  0xe0   :  { %420 = vst.msk [vmem:[#allocation3 + $0x28] sm:$0xff] %vm25_vm1, %v404_v13  ;;  %v403_v24 = vmax.f32 %v387_v15, 0.0  ;;  %v390_v28 = vadd.f32 %v374_v11, %v358_v20  ;;  %v357_v30 = vadd.f32 %v669_v52, %v334_v22 }
  0xe1   :  { %428 = vst.msk [vmem:[#allocation3 + $0x68] sm:$0xff] %vm25_vm1, %v412_v14  ;;  %v411_v25 = vmax.f32 %v395_v16, 0.0  ;;  %v398_v29 = vadd.f32 %v382_v17, %v366_v21  ;;  %v365_v44 = vadd.f32 %v669_v52, %v342_v23 }
  0xe2   :  { %419 = vst.msk [vmem:[#allocation3 + $0x20] sm:$0xff] %vm25_vm1, %v403_v24  ;;  %v406_v31 = vmax.f32 %v390_v28, 0.0  ;;  %v389_v33 = vadd.f32 %v373_v26, %v357_v30 }
  0xe3   :  { %427 = vst.msk [vmem:[#allocation3 + $0x60] sm:$0xff] %vm25_vm1, %v411_v25  ;;  %v414_v32 = vmax.f32 %v398_v29, 0.0  ;;  %v397_v34 = vadd.f32 %v381_v27, %v365_v44 }
  0xe4   :  { %422 = vst.msk [vmem:[#allocation3 + $0x38] sm:$0xff] %vm25_vm1, %v406_v31  ;;  %v405_v35 = vmax.f32 %v389_v33, 0.0 }
  0xe5   :  { %430 = vst.msk [vmem:[#allocation3 + $0x78] sm:$0xff] %vm25_vm1, %v414_v32  ;;  %v413_v36 = vmax.f32 %v397_v34, 0.0 }
  0xe6   :  { %421 = vst.msk [vmem:[#allocation3 + $0x30] sm:$0xff] %vm25_vm1, %v405_v35 }
  0xe7   :  { %429 = vst.msk [vmem:[#allocation3 + $0x70] sm:$0xff] %vm25_vm1, %v413_v36 }
  0xe8   :  { %525 = shalt.err (!%p522_p4)
}
  0xe9   :  { %s538_s6 = smov 128   ;;  %s539_s7 = smov 8  }
  0xea   :  { %442 = dma.vmem_to_hbm [thread:$0]  %s437_s30, 2048, %s783_s5, [#allocation4], %s538_s6, %s538_s6, %s539_s7  }
  0xeb   :  { %534 = dma.done.wait [#allocation4], 2048  }
  0xec   :  { %535 = vsyncadd [#allocation4], 4294965248 }
  0xed   :  { %446 = vsyncpa [#allocation4], 1 }

</bundles_post_ra>
